<compile_context>
chip_gen: v7x
topology: tpu7x:2x2x1
jax: 0.10.0
libtpu: 0.0.40
codegen_flags: <defaults>
</compile_context>

<pallas_src>
import jax
import jax.numpy as jnp
from jax.experimental import pallas as pl
from jax.experimental.pallas import tpu as pltpu


def _round_up(x, m):
    return ((x + m - 1) // m) * m


def evi_fc_kernel(mu_ref, sigma_ref, w_ref, wT_ref, b_ref, sp_ref,
                  eyeF_ref, eyeO_ref, mu_f_ref, sigma_f_ref):
    # mu_ref:      (TB, F)
    # sigma_ref:   (TB, F, F)
    # w_ref:       (OUT, F)       replicated
    # wT_ref:      (F, OUT)       replicated
    # b_ref:       (1, OUT)       replicated
    # sp_ref:      (1, OUT)       replicated  (softplus(sigma_fc_weight), precomputed)
    # eyeF_ref:    (F, F)         replicated identity mask
    # eyeO_ref:    (OUT, OUT)     replicated identity mask
    # mu_f_ref:    (TB, OUT)
    # sigma_f_ref: (TB, OUT*OUT)  lane-dense flattened covariance output
    tb, F = mu_ref.shape
    OUT = w_ref.shape[0]

    mu = mu_ref[...].astype(jnp.float32)
    sig = sigma_ref[...].astype(jnp.float32)
    w = w_ref[...].astype(jnp.float32)
    wT = wT_ref[...].astype(jnp.float32)
    bias = b_ref[...].astype(jnp.float32)
    sp = sp_ref[...].astype(jnp.float32)
    eyeF = eyeF_ref[...].astype(jnp.float32)
    eyeO = eyeO_ref[...].astype(jnp.float32)

    # ---- mean path: one MXU matmul for all TB samples -----------------------
    mu_f = jnp.dot(mu, wT, preferred_element_type=jnp.float32) + bias
    mu_f_ref[...] = mu_f.astype(mu_f_ref.dtype)

    # ---- quadratic form W @ Sigma @ W^T --------------------------------------
    # (1) flat matmul: (TB*F, F) @ (F, OUT)  ==  Sigma_b @ W^T for every sample
    sigWT = jnp.dot(sig.reshape(tb * F, F), wT,
                    preferred_element_type=jnp.float32).reshape(tb, F, OUT)
    # (2) batched contraction: quad[b, o, p] = sum_f W[o, f] * (Sigma_b W^T)[f, p]
    w_b = jnp.broadcast_to(w, (tb, OUT, F))
    quad = jnp.einsum('bof,bfp->bop', w_b, sigWT,
                      preferred_element_type=jnp.float32)         # (TB, OUT, OUT)

    # ---- trace(Sigma) and ||mu||^2 (mask-multiply + reductions) --------------
    tr = jnp.sum(jnp.sum(sig * eyeF[None, :, :], axis=2), axis=1,
                 keepdims=True)                                    # (TB, 1)
    ss = jnp.sum(mu * mu, axis=1, keepdims=True)                   # (TB, 1)
    dvals = sp * (tr + ss)                                         # (TB, OUT)

    # ---- assemble the lane-dense (TB, OUT*OUT) output row by row -------------
    # Row o of each sample's OUTxOUT matrix goes to lanes [o*OUT, (o+1)*OUT);
    # the diagonal term of row o is dvals[:, o] placed at column o (one-hot row).
    for o in range(OUT):  # OUT is small for this layer; static unroll
        row = quad[:, o, :] + dvals[:, o:o + 1] * eyeO[o:o + 1, :]
        sigma_f_ref[:, o * OUT:(o + 1) * OUT] = row.astype(sigma_f_ref.dtype)


def evi_fully_connected(mu, sigma, w, b, sigma_w, *, tb=None):
    """mu: (B, F), sigma: (B, F, F), w: (OUT, F), b: (OUT,), sigma_w: (1, OUT)."""
    B, F = mu.shape
    OUT = w.shape[0]
    dtype = mu.dtype

    # ---- grid-invariant precompute, hoisted out of the kernel ----------------
    wT = jnp.transpose(w)                                   # (F, OUT)
    sp = jnp.logaddexp(0.0, sigma_w).astype(jnp.float32)    # stable softplus
    b2 = b.reshape(1, OUT)
    eyeF = jnp.eye(F, dtype=jnp.float32)
    eyeO = jnp.eye(OUT, dtype=jnp.float32)

    # ---- batch-tile size -------------------------------------------------------
    # Keep double-buffered sigma blocks well under the default scoped VMEM on every
    # generation (v5e 16 MiB, v6e/v7x 32 MiB scoped default; v7x has only 64 MiB
    # total VMEM), keep TB a multiple of 8 for sublane-aligned blocks/stores, and
    # never tile past the (8-rounded) batch.
    if tb is None:
        per_sample_bytes = F * F * 4
        tb = (2 * 1024 * 1024) // max(1, per_sample_bytes)   # ~2 MiB sigma / buffer
        tb = max(8, min(64, (tb // 8) * 8))
    tb = max(1, min(tb, _round_up(max(B, 1), 8)))
    B_pad = _round_up(max(B, 1), tb)

    pad = B_pad - B
    if pad:
        mu_in = jnp.pad(mu, ((0, pad), (0, 0)))
        sigma_in = jnp.pad(sigma, ((0, pad), (0, 0), (0, 0)))
    else:
        mu_in, sigma_in = mu, sigma

    grid = (B_pad // tb,)

    mu_f, sigma_f_flat = pl.pallas_call(
        evi_fc_kernel,
        out_shape=(
            jax.ShapeDtypeStruct((B_pad, OUT), dtype),
            jax.ShapeDtypeStruct((B_pad, OUT * OUT), dtype),
        ),
        grid_spec=pltpu.PrefetchScalarGridSpec(
            num_scalar_prefetch=0,
            grid=grid,
            in_specs=[
                pl.BlockSpec((tb, F), lambda i: (i, 0)),           # mu (per tile)
                pl.BlockSpec((tb, F, F), lambda i: (i, 0, 0)),     # sigma (per tile)
                pl.BlockSpec((OUT, F), lambda i: (0, 0)),          # W        (replicated)
                pl.BlockSpec((F, OUT), lambda i: (0, 0)),          # W^T      (replicated)
                pl.BlockSpec((1, OUT), lambda i: (0, 0)),          # bias     (replicated)
                pl.BlockSpec((1, OUT), lambda i: (0, 0)),          # softplus (replicated)
                pl.BlockSpec((F, F), lambda i: (0, 0)),            # eye_F    (replicated)
                pl.BlockSpec((OUT, OUT), lambda i: (0, 0)),        # eye_OUT  (replicated)
            ],
            out_specs=[
                pl.BlockSpec((tb, OUT), lambda i: (i, 0)),
                pl.BlockSpec((tb, OUT * OUT), lambda i: (i, 0)),
            ],
        ),
        compiler_params=pltpu.CompilerParams(
            dimension_semantics=("parallel",)),
    )(mu_in, sigma_in, w, wT, b2, sp, eyeF, eyeO)

    mu_f = mu_f[:B]
    sigma_f = sigma_f_flat[:B].reshape(B, OUT, OUT)
    return mu_f, sigma_f


def ref_forward(mu, sigma, w, b, sigma_w):
    """Pure-JAX reference mirroring the PyTorch forward (input_flag=False, 3-D sigma)."""
    B, F = mu.shape
    OUT = w.shape[0]
    mu_f = mu @ w.T + b
    quad = jnp.einsum('of,bfg,pg->bop', w, sigma, w)
    tr = jnp.trace(sigma, axis1=1, axis2=2)                 # (B,)
    ss = jnp.sum(mu * mu, axis=1)                           # (B,)
    sp = jnp.log1p(jnp.exp(sigma_w))                        # (1, OUT)
    dvals = sp * (tr + ss)[:, None]                         # (B, OUT)
    sigma_f = quad + dvals[:, :, None] * jnp.eye(OUT, dtype=mu.dtype)
    return mu_f, sigma_f


if __name__ == "__main__":
    B = 2
    in_features = 32
    out_features = 16

    key = jax.random.PRNGKey(0)
    k_w, k_sw, k_mu, k_sig = jax.random.split(key, 4)

    # Deterministic parameter init matching the module's __init__ distributions.
    mean_mu, mean_sigma = 0.0, 0.1
    sigma_min, sigma_max = -12.0, -2.2
    mean_bias = 0.001

    w = mean_mu + mean_sigma * jax.random.normal(
        k_w, (out_features, in_features), dtype=jnp.float32)
    b = jnp.full((out_features,), mean_bias, dtype=jnp.float32)
    sigma_w = jax.random.uniform(
        k_sw, (1, out_features), minval=sigma_min, maxval=sigma_max,
        dtype=jnp.float32)
    # sigma_fc_bias (scalar param) exists in the module but is unused in forward.

    # Inputs: mu (B, F) and a PSD-ish sigma (B, F, F).
    mu = jax.random.normal(k_mu, (B, in_features), dtype=jnp.float32)
    a = 0.1 * jax.random.normal(k_sig, (B, in_features, in_features),
                                dtype=jnp.float32)
    sigma = jnp.einsum('bij,bkj->bik', a, a) + 0.05 * jnp.eye(
        in_features, dtype=jnp.float32)

    mu_f, sigma_f = evi_fully_connected(mu, sigma, w, b, sigma_w)
    jax.block_until_ready((mu_f, sigma_f))

    mu_f_ref, sigma_f_ref = ref_forward(mu, sigma, w, b, sigma_w)
    assert mu_f.shape == (B, out_features)
    assert sigma_f.shape == (B, out_features, out_features)
    assert jnp.allclose(mu_f, mu_f_ref, atol=1e-5, rtol=1e-5)
    assert jnp.allclose(sigma_f, sigma_f_ref, atol=1e-5, rtol=1e-5)

    print("KERNEL_OK")
</pallas_src>

<mosaic_0001>
module attributes {stable_mosaic.version = 11 : i64} {
  func.func @evi_fc_kernel(%arg0: i32, %arg1: memref<8x32xf32, #tpu.memory_space<vmem>>, %arg2: memref<8x32x32xf32, #tpu.memory_space<vmem>>, %arg3: memref<16x32xf32, #tpu.memory_space<vmem>>, %arg4: memref<32x16xf32, #tpu.memory_space<vmem>>, %arg5: memref<1x16xf32, #tpu.memory_space<vmem>>, %arg6: memref<1x16xf32, #tpu.memory_space<vmem>>, %arg7: memref<32x32xf32, #tpu.memory_space<vmem>>, %arg8: memref<16x16xf32, #tpu.memory_space<vmem>>, %arg9: memref<8x16xf32, #tpu.memory_space<vmem>>, %arg10: memref<8x256xf32, #tpu.memory_space<vmem>>) attributes {dimension_semantics = [#tpu.dimension_semantics<parallel>], iteration_bounds = array<i64: 1>, scalar_prefetch = 0 : i64, scratch_operands = 0 : i64, tpu.core_type = #tpu.core_type<tc>, window_params = [{transform_indices = @transform_0, window_bounds = array<i64: 8, 32>}, {transform_indices = @transform_1, window_bounds = array<i64: 8, 32, 32>}, {pipeline_mode = #tpu.pipeline_mode<synchronous>, transform_indices = @transform_2, window_bounds = array<i64: 16, 32>}, {pipeline_mode = #tpu.pipeline_mode<synchronous>, transform_indices = @transform_3, window_bounds = array<i64: 32, 16>}, {pipeline_mode = #tpu.pipeline_mode<synchronous>, transform_indices = @transform_4, window_bounds = array<i64: 1, 16>}, {pipeline_mode = #tpu.pipeline_mode<synchronous>, transform_indices = @transform_5, window_bounds = array<i64: 1, 16>}, {pipeline_mode = #tpu.pipeline_mode<synchronous>, transform_indices = @transform_6, window_bounds = array<i64: 32, 32>}, {pipeline_mode = #tpu.pipeline_mode<synchronous>, transform_indices = @transform_7, window_bounds = array<i64: 16, 16>}, {transform_indices = @transform_8, window_bounds = array<i64: 8, 16>}, {transform_indices = @transform_9, window_bounds = array<i64: 8, 256>}]} {
    %c0 = arith.constant 0 : index
    %c0_0 = arith.constant 0 : index
    %0 = vector.load %arg1[%c0, %c0_0] : memref<8x32xf32, #tpu.memory_space<vmem>>, vector<8x32xf32>
    %c0_1 = arith.constant 0 : index
    %c0_2 = arith.constant 0 : index
    %c0_3 = arith.constant 0 : index
    %1 = vector.load %arg2[%c0_1, %c0_2, %c0_3] : memref<8x32x32xf32, #tpu.memory_space<vmem>>, vector<8x32x32xf32>
    %c0_4 = arith.constant 0 : index
    %c0_5 = arith.constant 0 : index
    %2 = vector.load %arg3[%c0_4, %c0_5] : memref<16x32xf32, #tpu.memory_space<vmem>>, vector<16x32xf32>
    %c0_6 = arith.constant 0 : index
    %c0_7 = arith.constant 0 : index
    %3 = vector.load %arg4[%c0_6, %c0_7] : memref<32x16xf32, #tpu.memory_space<vmem>>, vector<32x16xf32>
    %c0_8 = arith.constant 0 : index
    %c0_9 = arith.constant 0 : index
    %4 = vector.load %arg5[%c0_8, %c0_9] : memref<1x16xf32, #tpu.memory_space<vmem>>, vector<1x16xf32>
    %c0_10 = arith.constant 0 : index
    %c0_11 = arith.constant 0 : index
    %5 = vector.load %arg6[%c0_10, %c0_11] : memref<1x16xf32, #tpu.memory_space<vmem>>, vector<1x16xf32>
    %c0_12 = arith.constant 0 : index
    %c0_13 = arith.constant 0 : index
    %6 = vector.load %arg7[%c0_12, %c0_13] : memref<32x32xf32, #tpu.memory_space<vmem>>, vector<32x32xf32>
    %c0_14 = arith.constant 0 : index
    %c0_15 = arith.constant 0 : index
    %7 = vector.load %arg8[%c0_14, %c0_15] : memref<16x16xf32, #tpu.memory_space<vmem>>, vector<16x16xf32>
    %cst = arith.constant dense<0.000000e+00> : vector<8x16xf32>
    %8 = tpu.matmul %0, %3, %cst {dimension_numbers = #tpu.dot_dimension_numbers<[1], [0], [0], [1], [0, 0, 1, 1], [], []>} : vector<8x32xf32>, vector<32x16xf32>, vector<8x16xf32> -> vector<8x16xf32>
    %9 = vector.broadcast %4 : vector<1x16xf32> to vector<8x16xf32>
    %10 = arith.addf %8, %9 : vector<8x16xf32>
    %c0_16 = arith.constant 0 : index
    %c0_17 = arith.constant 0 : index
    %11 = vector.load %arg9[%c0_16, %c0_17] : memref<8x16xf32, #tpu.memory_space<vmem>>, vector<8x16xf32>
    tpu.vector_store %arg9[%c0_16, %c0_17], %10 {strides = array<i32>} : memref<8x16xf32, #tpu.memory_space<vmem>>, vector<8x16xf32>,
    %12 = vector.shape_cast %1 : vector<8x32x32xf32> to vector<256x32xf32>
    %cst_18 = arith.constant dense<0.000000e+00> : vector<256x16xf32>
    %13 = tpu.matmul %12, %3, %cst_18 {dimension_numbers = #tpu.dot_dimension_numbers<[1], [0], [0], [1], [0, 0, 1, 1], [], []>} : vector<256x32xf32>, vector<32x16xf32>, vector<256x16xf32> -> vector<256x16xf32>
    %14 = vector.shape_cast %13 : vector<256x16xf32> to vector<8x32x16xf32>
    %15 = vector.shape_cast %2 : vector<16x32xf32> to vector<1x16x32xf32>
    %16 = vector.broadcast %15 : vector<1x16x32xf32> to vector<8x16x32xf32>
    "tpu.trace_start"() <{level = 10 : i32, message = "bof,bfp->bop"}> : () -> ()
    %cst_19 = arith.constant dense<0.000000e+00> : vector<8x16x16xf32>
    %17 = tpu.matmul %16, %14, %cst_19 {dimension_numbers = #tpu.dot_dimension_numbers<[2], [1], [1], [2], [0, 0, 0, 1, 1, 2], [0], [0]>} : vector<8x16x32xf32>, vector<8x32x16xf32>, vector<8x16x16xf32> -> vector<8x16x16xf32>
    "tpu.trace_stop"() : () -> ()
    %18 = vector.shape_cast %6 : vector<32x32xf32> to vector<1x32x32xf32>
    %19 = vector.broadcast %18 : vector<1x32x32xf32> to vector<8x32x32xf32>
    %20 = arith.mulf %1, %19 : vector<8x32x32xf32>
    %cst_20 = arith.constant dense<0.000000e+00> : vector<8x32xf32>
    %21 = vector.multi_reduction <add>, %20, %cst_20 [2] : vector<8x32x32xf32> to vector<8x32xf32>
    %cst_21 = arith.constant dense<0.000000e+00> : vector<8xf32>
    %22 = vector.multi_reduction <add>, %21, %cst_21 [1] : vector<8x32xf32> to vector<8xf32>
    %23 = vector.shape_cast %22 : vector<8xf32> to vector<8x1xf32>
    %24 = arith.mulf %0, %0 : vector<8x32xf32>
    %cst_22 = arith.constant dense<0.000000e+00> : vector<8xf32>
    %25 = vector.multi_reduction <add>, %24, %cst_22 [1] : vector<8x32xf32> to vector<8xf32>
    %26 = vector.shape_cast %25 : vector<8xf32> to vector<8x1xf32>
    %27 = arith.addf %23, %26 : vector<8x1xf32>
    %28 = vector.broadcast %5 : vector<1x16xf32> to vector<8x16xf32>
    %29 = vector.broadcast %27 : vector<8x1xf32> to vector<8x16xf32>
    %30 = arith.mulf %28, %29 : vector<8x16xf32>
    %31 = vector.extract_strided_slice %17 {offsets = [0, 0, 0], sizes = [8, 1, 16], strides = [1, 1, 1]} : vector<8x16x16xf32> to vector<8x1x16xf32>
    %32 = vector.shape_cast %31 : vector<8x1x16xf32> to vector<8x16xf32>
    %33 = vector.extract_strided_slice %30 {offsets = [0, 0], sizes = [8, 1], strides = [1, 1]} : vector<8x16xf32> to vector<8x1xf32>
    %34 = vector.extract_strided_slice %7 {offsets = [0, 0], sizes = [1, 16], strides = [1, 1]} : vector<16x16xf32> to vector<1x16xf32>
    %35 = vector.broadcast %33 : vector<8x1xf32> to vector<8x16xf32>
    %36 = vector.broadcast %34 : vector<1x16xf32> to vector<8x16xf32>
    %37 = arith.mulf %35, %36 : vector<8x16xf32>
    %38 = arith.addf %32, %37 : vector<8x16xf32>
    %c0_23 = arith.constant 0 : index
    %c0_24 = arith.constant 0 : index
    %39 = vector.load %arg10[%c0_23, %c0_24] : memref<8x256xf32, #tpu.memory_space<vmem>>, vector<8x16xf32>
    tpu.vector_store %arg10[%c0_23, %c0_24], %38 {strides = array<i32>} : memref<8x256xf32, #tpu.memory_space<vmem>>, vector<8x16xf32>,
    %40 = vector.extract_strided_slice %17 {offsets = [0, 1, 0], sizes = [8, 1, 16], strides = [1, 1, 1]} : vector<8x16x16xf32> to vector<8x1x16xf32>
    %41 = vector.shape_cast %40 : vector<8x1x16xf32> to vector<8x16xf32>
    %42 = vector.extract_strided_slice %30 {offsets = [0, 1], sizes = [8, 1], strides = [1, 1]} : vector<8x16xf32> to vector<8x1xf32>
    %43 = vector.extract_strided_slice %7 {offsets = [1, 0], sizes = [1, 16], strides = [1, 1]} : vector<16x16xf32> to vector<1x16xf32>
    %44 = vector.broadcast %42 : vector<8x1xf32> to vector<8x16xf32>
    %45 = vector.broadcast %43 : vector<1x16xf32> to vector<8x16xf32>
    %46 = arith.mulf %44, %45 : vector<8x16xf32>
    %47 = arith.addf %41, %46 : vector<8x16xf32>
    %c0_25 = arith.constant 0 : index
    %c16 = arith.constant 16 : index
    %48 = vector.load %arg10[%c0_25, %c16] : memref<8x256xf32, #tpu.memory_space<vmem>>, vector<8x16xf32>
    tpu.vector_store %arg10[%c0_25, %c16], %47 {strides = array<i32>} : memref<8x256xf32, #tpu.memory_space<vmem>>, vector<8x16xf32>,
    %49 = vector.extract_strided_slice %17 {offsets = [0, 2, 0], sizes = [8, 1, 16], strides = [1, 1, 1]} : vector<8x16x16xf32> to vector<8x1x16xf32>
    %50 = vector.shape_cast %49 : vector<8x1x16xf32> to vector<8x16xf32>
    %51 = vector.extract_strided_slice %30 {offsets = [0, 2], sizes = [8, 1], strides = [1, 1]} : vector<8x16xf32> to vector<8x1xf32>
    %52 = vector.extract_strided_slice %7 {offsets = [2, 0], sizes = [1, 16], strides = [1, 1]} : vector<16x16xf32> to vector<1x16xf32>
    %53 = vector.broadcast %51 : vector<8x1xf32> to vector<8x16xf32>
    %54 = vector.broadcast %52 : vector<1x16xf32> to vector<8x16xf32>
    %55 = arith.mulf %53, %54 : vector<8x16xf32>
    %56 = arith.addf %50, %55 : vector<8x16xf32>
    %c0_26 = arith.constant 0 : index
    %c32 = arith.constant 32 : index
    %57 = vector.load %arg10[%c0_26, %c32] : memref<8x256xf32, #tpu.memory_space<vmem>>, vector<8x16xf32>
    tpu.vector_store %arg10[%c0_26, %c32], %56 {strides = array<i32>} : memref<8x256xf32, #tpu.memory_space<vmem>>, vector<8x16xf32>,
    %58 = vector.extract_strided_slice %17 {offsets = [0, 3, 0], sizes = [8, 1, 16], strides = [1, 1, 1]} : vector<8x16x16xf32> to vector<8x1x16xf32>
    %59 = vector.shape_cast %58 : vector<8x1x16xf32> to vector<8x16xf32>
    %60 = vector.extract_strided_slice %30 {offsets = [0, 3], sizes = [8, 1], strides = [1, 1]} : vector<8x16xf32> to vector<8x1xf32>
    %61 = vector.extract_strided_slice %7 {offsets = [3, 0], sizes = [1, 16], strides = [1, 1]} : vector<16x16xf32> to vector<1x16xf32>
    %62 = vector.broadcast %60 : vector<8x1xf32> to vector<8x16xf32>
    %63 = vector.broadcast %61 : vector<1x16xf32> to vector<8x16xf32>
    %64 = arith.mulf %62, %63 : vector<8x16xf32>
    %65 = arith.addf %59, %64 : vector<8x16xf32>
    %c0_27 = arith.constant 0 : index
    %c48 = arith.constant 48 : index
    %66 = vector.load %arg10[%c0_27, %c48] : memref<8x256xf32, #tpu.memory_space<vmem>>, vector<8x16xf32>
    tpu.vector_store %arg10[%c0_27, %c48], %65 {strides = array<i32>} : memref<8x256xf32, #tpu.memory_space<vmem>>, vector<8x16xf32>,
    %67 = vector.extract_strided_slice %17 {offsets = [0, 4, 0], sizes = [8, 1, 16], strides = [1, 1, 1]} : vector<8x16x16xf32> to vector<8x1x16xf32>
    %68 = vector.shape_cast %67 : vector<8x1x16xf32> to vector<8x16xf32>
    %69 = vector.extract_strided_slice %30 {offsets = [0, 4], sizes = [8, 1], strides = [1, 1]} : vector<8x16xf32> to vector<8x1xf32>
    %70 = vector.extract_strided_slice %7 {offsets = [4, 0], sizes = [1, 16], strides = [1, 1]} : vector<16x16xf32> to vector<1x16xf32>
    %71 = vector.broadcast %69 : vector<8x1xf32> to vector<8x16xf32>
    %72 = vector.broadcast %70 : vector<1x16xf32> to vector<8x16xf32>
    %73 = arith.mulf %71, %72 : vector<8x16xf32>
    %74 = arith.addf %68, %73 : vector<8x16xf32>
    %c0_28 = arith.constant 0 : index
    %c64 = arith.constant 64 : index
    %75 = vector.load %arg10[%c0_28, %c64] : memref<8x256xf32, #tpu.memory_space<vmem>>, vector<8x16xf32>
    tpu.vector_store %arg10[%c0_28, %c64], %74 {strides = array<i32>} : memref<8x256xf32, #tpu.memory_space<vmem>>, vector<8x16xf32>,
    %76 = vector.extract_strided_slice %17 {offsets = [0, 5, 0], sizes = [8, 1, 16], strides = [1, 1, 1]} : vector<8x16x16xf32> to vector<8x1x16xf32>
    %77 = vector.shape_cast %76 : vector<8x1x16xf32> to vector<8x16xf32>
    %78 = vector.extract_strided_slice %30 {offsets = [0, 5], sizes = [8, 1], strides = [1, 1]} : vector<8x16xf32> to vector<8x1xf32>
    %79 = vector.extract_strided_slice %7 {offsets = [5, 0], sizes = [1, 16], strides = [1, 1]} : vector<16x16xf32> to vector<1x16xf32>
    %80 = vector.broadcast %78 : vector<8x1xf32> to vector<8x16xf32>
    %81 = vector.broadcast %79 : vector<1x16xf32> to vector<8x16xf32>
    %82 = arith.mulf %80, %81 : vector<8x16xf32>
    %83 = arith.addf %77, %82 : vector<8x16xf32>
    %c0_29 = arith.constant 0 : index
    %c80 = arith.constant 80 : index
    %84 = vector.load %arg10[%c0_29, %c80] : memref<8x256xf32, #tpu.memory_space<vmem>>, vector<8x16xf32>
    tpu.vector_store %arg10[%c0_29, %c80], %83 {strides = array<i32>} : memref<8x256xf32, #tpu.memory_space<vmem>>, vector<8x16xf32>,
    %85 = vector.extract_strided_slice %17 {offsets = [0, 6, 0], sizes = [8, 1, 16], strides = [1, 1, 1]} : vector<8x16x16xf32> to vector<8x1x16xf32>
    %86 = vector.shape_cast %85 : vector<8x1x16xf32> to vector<8x16xf32>
    %87 = vector.extract_strided_slice %30 {offsets = [0, 6], sizes = [8, 1], strides = [1, 1]} : vector<8x16xf32> to vector<8x1xf32>
    %88 = vector.extract_strided_slice %7 {offsets = [6, 0], sizes = [1, 16], strides = [1, 1]} : vector<16x16xf32> to vector<1x16xf32>
    %89 = vector.broadcast %87 : vector<8x1xf32> to vector<8x16xf32>
    %90 = vector.broadcast %88 : vector<1x16xf32> to vector<8x16xf32>
    %91 = arith.mulf %89, %90 : vector<8x16xf32>
    %92 = arith.addf %86, %91 : vector<8x16xf32>
    %c0_30 = arith.constant 0 : index
    %c96 = arith.constant 96 : index
    %93 = vector.load %arg10[%c0_30, %c96] : memref<8x256xf32, #tpu.memory_space<vmem>>, vector<8x16xf32>
    tpu.vector_store %arg10[%c0_30, %c96], %92 {strides = array<i32>} : memref<8x256xf32, #tpu.memory_space<vmem>>, vector<8x16xf32>,
    %94 = vector.extract_strided_slice %17 {offsets = [0, 7, 0], sizes = [8, 1, 16], strides = [1, 1, 1]} : vector<8x16x16xf32> to vector<8x1x16xf32>
    %95 = vector.shape_cast %94 : vector<8x1x16xf32> to vector<8x16xf32>
    %96 = vector.extract_strided_slice %30 {offsets = [0, 7], sizes = [8, 1], strides = [1, 1]} : vector<8x16xf32> to vector<8x1xf32>
    %97 = vector.extract_strided_slice %7 {offsets = [7, 0], sizes = [1, 16], strides = [1, 1]} : vector<16x16xf32> to vector<1x16xf32>
    %98 = vector.broadcast %96 : vector<8x1xf32> to vector<8x16xf32>
    %99 = vector.broadcast %97 : vector<1x16xf32> to vector<8x16xf32>
    %100 = arith.mulf %98, %99 : vector<8x16xf32>
    %101 = arith.addf %95, %100 : vector<8x16xf32>
    %c0_31 = arith.constant 0 : index
    %c112 = arith.constant 112 : index
    %102 = vector.load %arg10[%c0_31, %c112] : memref<8x256xf32, #tpu.memory_space<vmem>>, vector<8x16xf32>
    tpu.vector_store %arg10[%c0_31, %c112], %101 {strides = array<i32>} : memref<8x256xf32, #tpu.memory_space<vmem>>, vector<8x16xf32>,
    %103 = vector.extract_strided_slice %17 {offsets = [0, 8, 0], sizes = [8, 1, 16], strides = [1, 1, 1]} : vector<8x16x16xf32> to vector<8x1x16xf32>
    %104 = vector.shape_cast %103 : vector<8x1x16xf32> to vector<8x16xf32>
    %105 = vector.extract_strided_slice %30 {offsets = [0, 8], sizes = [8, 1], strides = [1, 1]} : vector<8x16xf32> to vector<8x1xf32>
    %106 = vector.extract_strided_slice %7 {offsets = [8, 0], sizes = [1, 16], strides = [1, 1]} : vector<16x16xf32> to vector<1x16xf32>
    %107 = vector.broadcast %105 : vector<8x1xf32> to vector<8x16xf32>
    %108 = vector.broadcast %106 : vector<1x16xf32> to vector<8x16xf32>
    %109 = arith.mulf %107, %108 : vector<8x16xf32>
    %110 = arith.addf %104, %109 : vector<8x16xf32>
    %c0_32 = arith.constant 0 : index
    %c128 = arith.constant 128 : index
    %111 = vector.load %arg10[%c0_32, %c128] : memref<8x256xf32, #tpu.memory_space<vmem>>, vector<8x16xf32>
    tpu.vector_store %arg10[%c0_32, %c128], %110 {strides = array<i32>} : memref<8x256xf32, #tpu.memory_space<vmem>>, vector<8x16xf32>,
    %112 = vector.extract_strided_slice %17 {offsets = [0, 9, 0], sizes = [8, 1, 16], strides = [1, 1, 1]} : vector<8x16x16xf32> to vector<8x1x16xf32>
    %113 = vector.shape_cast %112 : vector<8x1x16xf32> to vector<8x16xf32>
    %114 = vector.extract_strided_slice %30 {offsets = [0, 9], sizes = [8, 1], strides = [1, 1]} : vector<8x16xf32> to vector<8x1xf32>
    %115 = vector.extract_strided_slice %7 {offsets = [9, 0], sizes = [1, 16], strides = [1, 1]} : vector<16x16xf32> to vector<1x16xf32>
    %116 = vector.broadcast %114 : vector<8x1xf32> to vector<8x16xf32>
    %117 = vector.broadcast %115 : vector<1x16xf32> to vector<8x16xf32>
    %118 = arith.mulf %116, %117 : vector<8x16xf32>
    %119 = arith.addf %113, %118 : vector<8x16xf32>
    %c0_33 = arith.constant 0 : index
    %c144 = arith.constant 144 : index
    %120 = vector.load %arg10[%c0_33, %c144] : memref<8x256xf32, #tpu.memory_space<vmem>>, vector<8x16xf32>
    tpu.vector_store %arg10[%c0_33, %c144], %119 {strides = array<i32>} : memref<8x256xf32, #tpu.memory_space<vmem>>, vector<8x16xf32>,
    %121 = vector.extract_strided_slice %17 {offsets = [0, 10, 0], sizes = [8, 1, 16], strides = [1, 1, 1]} : vector<8x16x16xf32> to vector<8x1x16xf32>
    %122 = vector.shape_cast %121 : vector<8x1x16xf32> to vector<8x16xf32>
    %123 = vector.extract_strided_slice %30 {offsets = [0, 10], sizes = [8, 1], strides = [1, 1]} : vector<8x16xf32> to vector<8x1xf32>
    %124 = vector.extract_strided_slice %7 {offsets = [10, 0], sizes = [1, 16], strides = [1, 1]} : vector<16x16xf32> to vector<1x16xf32>
    %125 = vector.broadcast %123 : vector<8x1xf32> to vector<8x16xf32>
    %126 = vector.broadcast %124 : vector<1x16xf32> to vector<8x16xf32>
    %127 = arith.mulf %125, %126 : vector<8x16xf32>
    %128 = arith.addf %122, %127 : vector<8x16xf32>
    %c0_34 = arith.constant 0 : index
    %c160 = arith.constant 160 : index
    %129 = vector.load %arg10[%c0_34, %c160] : memref<8x256xf32, #tpu.memory_space<vmem>>, vector<8x16xf32>
    tpu.vector_store %arg10[%c0_34, %c160], %128 {strides = array<i32>} : memref<8x256xf32, #tpu.memory_space<vmem>>, vector<8x16xf32>,
    %130 = vector.extract_strided_slice %17 {offsets = [0, 11, 0], sizes = [8, 1, 16], strides = [1, 1, 1]} : vector<8x16x16xf32> to vector<8x1x16xf32>
    %131 = vector.shape_cast %130 : vector<8x1x16xf32> to vector<8x16xf32>
    %132 = vector.extract_strided_slice %30 {offsets = [0, 11], sizes = [8, 1], strides = [1, 1]} : vector<8x16xf32> to vector<8x1xf32>
    %133 = vector.extract_strided_slice %7 {offsets = [11, 0], sizes = [1, 16], strides = [1, 1]} : vector<16x16xf32> to vector<1x16xf32>
    %134 = vector.broadcast %132 : vector<8x1xf32> to vector<8x16xf32>
    %135 = vector.broadcast %133 : vector<1x16xf32> to vector<8x16xf32>
    %136 = arith.mulf %134, %135 : vector<8x16xf32>
    %137 = arith.addf %131, %136 : vector<8x16xf32>
    %c0_35 = arith.constant 0 : index
    %c176 = arith.constant 176 : index
    %138 = vector.load %arg10[%c0_35, %c176] : memref<8x256xf32, #tpu.memory_space<vmem>>, vector<8x16xf32>
    tpu.vector_store %arg10[%c0_35, %c176], %137 {strides = array<i32>} : memref<8x256xf32, #tpu.memory_space<vmem>>, vector<8x16xf32>,
    %139 = vector.extract_strided_slice %17 {offsets = [0, 12, 0], sizes = [8, 1, 16], strides = [1, 1, 1]} : vector<8x16x16xf32> to vector<8x1x16xf32>
    %140 = vector.shape_cast %139 : vector<8x1x16xf32> to vector<8x16xf32>
    %141 = vector.extract_strided_slice %30 {offsets = [0, 12], sizes = [8, 1], strides = [1, 1]} : vector<8x16xf32> to vector<8x1xf32>
    %142 = vector.extract_strided_slice %7 {offsets = [12, 0], sizes = [1, 16], strides = [1, 1]} : vector<16x16xf32> to vector<1x16xf32>
    %143 = vector.broadcast %141 : vector<8x1xf32> to vector<8x16xf32>
    %144 = vector.broadcast %142 : vector<1x16xf32> to vector<8x16xf32>
    %145 = arith.mulf %143, %144 : vector<8x16xf32>
    %146 = arith.addf %140, %145 : vector<8x16xf32>
    %c0_36 = arith.constant 0 : index
    %c192 = arith.constant 192 : index
    %147 = vector.load %arg10[%c0_36, %c192] : memref<8x256xf32, #tpu.memory_space<vmem>>, vector<8x16xf32>
    tpu.vector_store %arg10[%c0_36, %c192], %146 {strides = array<i32>} : memref<8x256xf32, #tpu.memory_space<vmem>>, vector<8x16xf32>,
    %148 = vector.extract_strided_slice %17 {offsets = [0, 13, 0], sizes = [8, 1, 16], strides = [1, 1, 1]} : vector<8x16x16xf32> to vector<8x1x16xf32>
    %149 = vector.shape_cast %148 : vector<8x1x16xf32> to vector<8x16xf32>
    %150 = vector.extract_strided_slice %30 {offsets = [0, 13], sizes = [8, 1], strides = [1, 1]} : vector<8x16xf32> to vector<8x1xf32>
    %151 = vector.extract_strided_slice %7 {offsets = [13, 0], sizes = [1, 16], strides = [1, 1]} : vector<16x16xf32> to vector<1x16xf32>
    %152 = vector.broadcast %150 : vector<8x1xf32> to vector<8x16xf32>
    %153 = vector.broadcast %151 : vector<1x16xf32> to vector<8x16xf32>
    %154 = arith.mulf %152, %153 : vector<8x16xf32>
    %155 = arith.addf %149, %154 : vector<8x16xf32>
    %c0_37 = arith.constant 0 : index
    %c208 = arith.constant 208 : index
    %156 = vector.load %arg10[%c0_37, %c208] : memref<8x256xf32, #tpu.memory_space<vmem>>, vector<8x16xf32>
    tpu.vector_store %arg10[%c0_37, %c208], %155 {strides = array<i32>} : memref<8x256xf32, #tpu.memory_space<vmem>>, vector<8x16xf32>,
    %157 = vector.extract_strided_slice %17 {offsets = [0, 14, 0], sizes = [8, 1, 16], strides = [1, 1, 1]} : vector<8x16x16xf32> to vector<8x1x16xf32>
    %158 = vector.shape_cast %157 : vector<8x1x16xf32> to vector<8x16xf32>
    %159 = vector.extract_strided_slice %30 {offsets = [0, 14], sizes = [8, 1], strides = [1, 1]} : vector<8x16xf32> to vector<8x1xf32>
    %160 = vector.extract_strided_slice %7 {offsets = [14, 0], sizes = [1, 16], strides = [1, 1]} : vector<16x16xf32> to vector<1x16xf32>
    %161 = vector.broadcast %159 : vector<8x1xf32> to vector<8x16xf32>
    %162 = vector.broadcast %160 : vector<1x16xf32> to vector<8x16xf32>
    %163 = arith.mulf %161, %162 : vector<8x16xf32>
    %164 = arith.addf %158, %163 : vector<8x16xf32>
    %c0_38 = arith.constant 0 : index
    %c224 = arith.constant 224 : index
    %165 = vector.load %arg10[%c0_38, %c224] : memref<8x256xf32, #tpu.memory_space<vmem>>, vector<8x16xf32>
    tpu.vector_store %arg10[%c0_38, %c224], %164 {strides = array<i32>} : memref<8x256xf32, #tpu.memory_space<vmem>>, vector<8x16xf32>,
    %166 = vector.extract_strided_slice %17 {offsets = [0, 15, 0], sizes = [8, 1, 16], strides = [1, 1, 1]} : vector<8x16x16xf32> to vector<8x1x16xf32>
    %167 = vector.shape_cast %166 : vector<8x1x16xf32> to vector<8x16xf32>
    %168 = vector.extract_strided_slice %30 {offsets = [0, 15], sizes = [8, 1], strides = [1, 1]} : vector<8x16xf32> to vector<8x1xf32>
    %169 = vector.extract_strided_slice %7 {offsets = [15, 0], sizes = [1, 16], strides = [1, 1]} : vector<16x16xf32> to vector<1x16xf32>
    %170 = vector.broadcast %168 : vector<8x1xf32> to vector<8x16xf32>
    %171 = vector.broadcast %169 : vector<1x16xf32> to vector<8x16xf32>
    %172 = arith.mulf %170, %171 : vector<8x16xf32>
    %173 = arith.addf %167, %172 : vector<8x16xf32>
    %c0_39 = arith.constant 0 : index
    %c240 = arith.constant 240 : index
    %174 = vector.load %arg10[%c0_39, %c240] : memref<8x256xf32, #tpu.memory_space<vmem>>, vector<8x16xf32>
    tpu.vector_store %arg10[%c0_39, %c240], %173 {strides = array<i32>} : memref<8x256xf32, #tpu.memory_space<vmem>>, vector<8x16xf32>,
    return
  }
  func.func @transform_0(%arg0: i32) -> (i32, i32) {
    %c0_i32 = arith.constant 0 : i32
    %c0_i32_0 = arith.constant 0 : i32
    return %arg0, %c0_i32 : i32, i32
  }
  func.func @transform_1(%arg0: i32) -> (i32, i32, i32) {
    %c0_i32 = arith.constant 0 : i32
    %c0_i32_0 = arith.constant 0 : i32
    %c0_i32_1 = arith.constant 0 : i32
    return %arg0, %c0_i32, %c0_i32_0 : i32, i32, i32
  }
  func.func @transform_2(%arg0: i32) -> (i32, i32) {
    %c0_i32 = arith.constant 0 : i32
    %c0_i32_0 = arith.constant 0 : i32
    %c0_i32_1 = arith.constant 0 : i32
    return %c0_i32, %c0_i32_0 : i32, i32
  }
  func.func @transform_3(%arg0: i32) -> (i32, i32) {
    %c0_i32 = arith.constant 0 : i32
    %c0_i32_0 = arith.constant 0 : i32
    %c0_i32_1 = arith.constant 0 : i32
    return %c0_i32, %c0_i32_0 : i32, i32
  }
  func.func @transform_4(%arg0: i32) -> (i32, i32) {
    %c0_i32 = arith.constant 0 : i32
    %c0_i32_0 = arith.constant 0 : i32
    %c0_i32_1 = arith.constant 0 : i32
    return %c0_i32, %c0_i32_0 : i32, i32
  }
  func.func @transform_5(%arg0: i32) -> (i32, i32) {
    %c0_i32 = arith.constant 0 : i32
    %c0_i32_0 = arith.constant 0 : i32
    %c0_i32_1 = arith.constant 0 : i32
    return %c0_i32, %c0_i32_0 : i32, i32
  }
  func.func @transform_6(%arg0: i32) -> (i32, i32) {
    %c0_i32 = arith.constant 0 : i32
    %c0_i32_0 = arith.constant 0 : i32
    %c0_i32_1 = arith.constant 0 : i32
    return %c0_i32, %c0_i32_0 : i32, i32
  }
  func.func @transform_7(%arg0: i32) -> (i32, i32) {
    %c0_i32 = arith.constant 0 : i32
    %c0_i32_0 = arith.constant 0 : i32
    %c0_i32_1 = arith.constant 0 : i32
    return %c0_i32, %c0_i32_0 : i32, i32
  }
  func.func @transform_8(%arg0: i32) -> (i32, i32) {
    %c0_i32 = arith.constant 0 : i32
    %c0_i32_0 = arith.constant 0 : i32
    return %arg0, %c0_i32 : i32, i32
  }
  func.func @transform_9(%arg0: i32) -> (i32, i32) {
    %c0_i32 = arith.constant 0 : i32
    %c0_i32_0 = arith.constant 0 : i32
    return %arg0, %c0_i32 : i32, i32
  }
}

</mosaic_0001>

<bundles_post_ra>
// kernel: tpu_custom_call.1
= control target key start
LH: loop header
LB: loop body
LE: loop exit
PB: predicated region body
PF: predicated region fallthrough
CT: control target
= control target key end

     0   :  { %15 = vsyncpa [#allocation3], 0  ;;  %s3879_s0 = inlined_call_operand.hbm [shape: f32[8,32], index: 0, kind: input, shape index: {}]   ;;  %s3880_s1 = inlined_call_operand.hbm [shape: f32[8,32,32], index: 1, kind: input, shape index: {}]   ;;  %s3881_s2 = inlined_call_operand.vmem [shape: f32[16,32], index: 2, kind: input, shape index: {}]   ;;  %s3882_s3 = inlined_call_operand.vmem [shape: f32[32,16], index: 3, kind: input, shape index: {}]   ;;  %s3883_s4 = inlined_call_operand.vmem [shape: f32[1,16], index: 4, kind: input, shape index: {}]   ;;  %s3884_s5 = inlined_call_operand.vmem [shape: f32[1,16], index: 5, kind: input, shape index: {}]   ;;  %s3885_s6 = inlined_call_operand.vmem [shape: f32[32,32], index: 6, kind: input, shape index: {}]   ;;  %s3886_s7 = inlined_call_operand.vmem [shape: f32[16,16], index: 7, kind: input, shape index: {}]   ;;  %s3887_s8 = inlined_call_operand.hbm [shape: f32[8,16], index: 8, kind: output, shape index: {0}]   ;;  %s3888_s9 = inlined_call_operand.hbm [shape: f32[8,256], index: 9, kind: output, shape index: {1}]  }
   0x1   :  { %16 = vsyncpa [#allocation6], 0 }
   0x2   :  { %17 = vsyncpa [#allocation4], 0 }
   0x3   :  { %18 = vsyncpa [#allocation9], 0  ;;  %s2961_s30 = smov [#allocation2]   ;;  %s2962_s11 = smov [#allocation5]  }
   0x4   :  { %s25_s10 = sshll.u32 %s2961_s30, 4  ;;  %s34_s12 = sshll.u32 %s2962_s11, 4  ;;  %s26_s10 = int_to_ptr.vmem [resolvable:$true] %s25_s10  ;;  %s3043_s12 = int_to_ptr.vmem [resolvable:$true] %s34_s12 }
   0x5   :  { %s2865_s15 = scalar_lea.hbm %s3879_s0, 128 }
   0x6   :  { %p2866_p0 = scmp.ne.s32.totalorder %s3879_s0, %s2865_s15  ;;  %p2869_p1 = scmp.lt.u32.totalorder %s2865_s15, %s3879_s0 }
   0x8   :  { %p2871_p2 = pnand %p2869_p1, %p2866_p0 }
   0xa   :  { %2874 = shalt.err (!%p2871_p2)
}
   0xb   :  { %s2875_s20 = scalar_lea.vmem %s26_s10, 128  ;;  %p2880_p4 = scmp.lt.s32.totalorder %s26_s10, %s26_s10 }
   0xc   :  { %p2876_p3 = scmp.ne.s32.totalorder %s26_s10, %s2875_s20  ;;  %p2881_p5 = scmp.lt.s32.totalorder %s2875_s20, %s2875_s20 }
   0xe   :  { %p2882_p6 = por %p2881_p5, %p2880_p4 }
  0x10   :  { %p2883_p7 = pnand %p2882_p6, %p2876_p3 }
  0x12   :  { %2886 = shalt.err (!%p2883_p7)
}
  0x13   :  { %28 = dma.hbm_to_vmem [thread:$0]  %s3879_s0, 128, %s26_s10, [#allocation3]  }
  0x14   :  { %s2887_s25 = scalar_lea.hbm %s3880_s1, 4096 }
  0x15   :  { %p2888_p8 = scmp.ne.s32.totalorder %s3880_s1, %s2887_s25  ;;  %p2891_p9 = scmp.lt.u32.totalorder %s2887_s25, %s3880_s1 }
  0x17   :  { %p2893_p10 = pnand %p2891_p9, %p2888_p8 }
  0x19   :  { %2896 = shalt.err (!%p2893_p10)
}
  0x1a   :  { %s2897_s30 = scalar_lea.vmem %s3043_s12, 4096  ;;  %p2902_p12 = scmp.lt.s32.totalorder %s3043_s12, %s3043_s12 }
  0x1b   :  { %p2898_p11 = scmp.ne.s32.totalorder %s3043_s12, %s2897_s30  ;;  %p2903_p13 = scmp.lt.s32.totalorder %s2897_s30, %s2897_s30 }
  0x1d   :  { %p2904_p0 = por %p2903_p13, %p2902_p12 }
  0x1f   :  { %p2905_p1 = pnand %p2904_p0, %p2898_p11 }
  0x21   :  { %2908 = shalt.err (!%p2905_p1)
}
  0x22   :  { %s2963_s0 = smov 128   ;;  %s2964_s10 = smov 8  }
  0x23   :  { %40 = dma.hbm_to_vmem [thread:$0]  %s3880_s1, 4096, %s3043_s12, [#allocation6], %s2963_s0, %s2963_s0, %s2964_s10  }
  0x24   :  { %2953 = dma.done.wait [#allocation3], 128  }
  0x25   :  { %2954 = vsyncadd [#allocation3], 4294967168 }
  0x26   :  { %2955 = dma.done.wait [#allocation6], 4096  }
  0x27   :  { %2956 = vsyncadd [#allocation6], 4294963200  ;;  %v94_v0 = vld [vmem:[%s3882_s3] sm:$0xff]  ;;  %v95_v1 = vld [vmem:[%s3882_s3 + $0x8] sm:$0xff]  ;;  %vm112_vm0 = vcmask 261120   ;;  %vm2966_vm1 = vmmov 0  }
  0x28   :  { %v64_v2 = vld [vmem:[#allocation5 + $0x20] sm:$0xff]  ;;  %v3080_v3 = vpack.c.bf16 %v95_v1, %v94_v0  ;;  %v3085_v4 = vld [vmem:[%s3885_s6] sm:$0xff]  ;;  %v96_v6 = vld [vmem:[%s3882_s3 + $0x10] sm:$0xff]  ;;  %vm1286_vm2 = vcmask 130112   ;;  %vm1293_vm3 = vcmask 195712   ;;  %vm1300_vm4 = vcmask 261312  }
  0x29   :  { %v60_v5 = vld [vmem:[#allocation5] sm:$0xff]  ;;  %v1119_v7 = vmul.f32 %v3085_v4, %v64_v2  ;;  %v97_v9 = vld [vmem:[%s3882_s3 + $0x18] sm:$0xff]  ;;  %v65_v10 = vld [vmem:[#allocation5 + $0x28] sm:$0xff]  ;;  %vm1435_vm5 = vcmask 1041409   ;;  %vm1437_vm6 = vcmask 1042434   ;;  %vm1439_vm7 = vcmask 1043459  }
  0x2a   :  { %v1115_v8 = vmul.f32 %v3085_v4, %v60_v5  ;;  %v3098_v11 = vld [vmem:[%s3885_s6 + $0x8] sm:$0xff]  ;;  %2602 = vmatprep.mubr.msk.f32.mxu1 %vm112_vm0, %v60_v5  ;;  %2745 = vmatprep.subr.bf16.mxu1 %v3080_v3  ;;  %v3102_v12 = vpack.c.bf16 %v97_v9, %v96_v6  ;;  %v61_v14 = vld [vmem:[#allocation5 + $0x8] sm:$0xff]  ;;  %v66_v15 = vld [vmem:[#allocation5 + $0x30] sm:$0xff]  ;;  %vm1441_vm8 = vcmask 1044484   ;;  %vm1443_vm9 = vcmask 1045509   ;;  %s2985_s14 = smov 32  }
  0x2b   :  { %v1120_v13 = vmul.f32 %v3098_v11, %v65_v10  ;;  %v3108_v16 = vld [vmem:[%s3885_s6 + $0x10] sm:$0xff]  ;;  %2747 = vmatpush3.bf16.msra.mxu1 %v3080_v3  ;;  %v1159_v17 = vsel %vm112_vm0, %v1119_v7, 0.0  ;;  %v1116_v19 = vmul.f32 %v3098_v11, %v61_v14  ;;  %v62_v20 = vld [vmem:[#allocation5 + $0x10] sm:$0xff]  ;;  %v68_v26 = vld [vmem:[#allocation5 + $0x40] sm:$0xff]  ;;  %vm1445_vm10 = vcmask 1046534   ;;  %s2986_s15 = smov 48  }
  0x2c   :  { %v1147_v18 = vsel %vm112_vm0, %v1115_v8, 0.0  ;;  %1160 = vadd.xlane.f32.xlu1 %v1159_v17  ;;  %2749 = vmatprep.subr.bf16.mxu1 %v3102_v12  ;;  %v1121_v23 = vmul.f32 %v3108_v16, %v66_v15  ;;  %v1117_v24 = vmul.f32 %v3108_v16, %v62_v20  ;;  %v69_v25 = vld [vmem:[#allocation5 + $0x48] sm:$0xff]  ;;  %v1123_v30 = vmul.f32 %v3085_v4, %v68_v26  ;;  %v67_v31 = vld [vmem:[#allocation5 + $0x38] sm:$0xff]  ;;  %v3128_v32 = vld [vmem:[%s3885_s6 + $0x18] sm:$0xff]  ;;  %s2987_s16 = smov 64   ;;  %s2988_s17 = smov 80  }
  0x2d   :  { %1148 = vadd.xlane.f32.xlu0 %v1147_v18  ;;  %v1162_v21 = vsel %vm112_vm0, %v1120_v13, 0.0  ;;  %v1150_v22 = vsel %vm112_vm0, %v1116_v19, 0.0  ;;  %v1124_v29 = vmul.f32 %v3098_v11, %v69_v25  ;;  %v63_v33 = vld [vmem:[#allocation5 + $0x18] sm:$0xff]  ;;  %v1122_v36 = vmul.f32 %v3128_v32, %v67_v31  ;;  %v72_v38 = vld [vmem:[#allocation5 + $0x60] sm:$0xff]  ;;  %v70_v39 = vld [vmem:[#allocation5 + $0x50] sm:$0xff]  ;;  %s2989_s18 = smov 96  }
  0x2e   :  { %v1165_v27 = vsel %vm112_vm0, %v1121_v23, 0.0  ;;  %v1153_v28 = vsel %vm112_vm0, %v1117_v24, 0.0  ;;  %v1171_v35 = vsel %vm112_vm0, %v1123_v30, 0.0  ;;  %v1118_v37 = vmul.f32 %v3128_v32, %v63_v33  ;;  %v71_v44 = vld [vmem:[#allocation5 + $0x58] sm:$0xff]  ;;  %v73_v45 = vld [vmem:[#allocation5 + $0x68] sm:$0xff]  ;;  %v76_v50 = vld [vmem:[#allocation5 + $0x80] sm:$0xff] }
  0x2f   :  { %2751 = vmatpush3.bf16.msra.mxu1 %v3102_v12  ;;  %v1174_v34 = vsel %vm112_vm0, %v1124_v29, 0.0  ;;  %v1168_v40 = vsel %vm112_vm0, %v1122_v36, 0.0  ;;  %v1127_v42 = vmul.f32 %v3085_v4, %v72_v38  ;;  %v1125_v43 = vmul.f32 %v3108_v16, %v70_v39  ;;  %v74_v51 = vld [vmem:[#allocation5 + $0x70] sm:$0xff]  ;;  %v75_v56 = vld [vmem:[#allocation5 + $0x78] sm:$0xff]  ;;  %v77_v57 = vld [vmem:[#allocation5 + $0x88] sm:$0xff]  ;;  %s2990_s19 = smov 112  }
  0x30   :  { %1163 = vadd.xlane.f32.xlu1 %v1162_v21  ;;  %v1156_v41 = vsel %vm112_vm0, %v1118_v37, 0.0  ;;  %v1126_v48 = vmul.f32 %v3128_v32, %v71_v44  ;;  %v1128_v49 = vmul.f32 %v3098_v11, %v73_v45  ;;  %v1131_v54 = vmul.f32 %v3085_v4, %v76_v50  ;;  %v80_v62 = vld [vmem:[#allocation5 + $0xa0] sm:$0xff]  ;;  %v78_v63 = vld [vmem:[#allocation5 + $0x90] sm:$0xff]  ;;  %v79_v6 = vld [vmem:[#allocation5 + $0x98] sm:$0xff]  ;;  %s2991_s1 = smov [#allocation7]  }
  0x31   :  { %1151 = vadd.xlane.f32.xlu0 %v1150_v22  ;;  %v1183_v46 = vsel %vm112_vm0, %v1127_v42, 0.0  ;;  %v1177_v47 = vsel %vm112_vm0, %v1125_v43, 0.0  ;;  %v1129_v55 = vmul.f32 %v3108_v16, %v74_v51  ;;  %v1130_v60 = vmul.f32 %v3128_v32, %v75_v56  ;;  %v81_v7 = vld [vmem:[#allocation5 + $0xa8] sm:$0xff]  ;;  %v83_v21 = vld [vmem:[#allocation5 + $0xb8] sm:$0xff]  ;;  %s2419_s12 = sshll.u32 %s2991_s1, 4  ;;  %s2420_s12 = int_to_ptr.vmem [resolvable:$true] %s2419_s12 }
  0x32   :  { %2603 = vmatmul.mubr.msk.f32.vlgmr.msra.gmra.mrb[0].mxu1 %vm112_vm0, %v61_v14  ;;  %v1180_v52 = vsel %vm112_vm0, %v1126_v48, 0.0  ;;  %v1186_v53 = vsel %vm112_vm0, %v1128_v49, 0.0  ;;  %v1195_v58 = vsel %vm112_vm0, %v1131_v54, 0.0  ;;  %v1132_v61 = vmul.f32 %v3098_v11, %v77_v57  ;;  %v84_v14 = vld [vmem:[#allocation5 + $0xc0] sm:$0xff]  ;;  %v85_v22 = vld [vmem:[#allocation5 + $0xc8] sm:$0xff]  ;;  %v3217_v49 = vld [vmem:[%s3881_s2] sm:$0xff]  ;;  %p2914_p3 = scmp.lt.s32.totalorder %s2420_s12, %s2420_s12 }
  0x33   :  { %2605 = vmatprep.mubr.msk.f32.mxu1 %vm112_vm0, %v62_v20  ;;  %v1189_v59 = vsel %vm112_vm0, %v1129_v55, 0.0  ;;  %v1192_v0 = vsel %vm112_vm0, %v1130_v60, 0.0  ;;  %v1133_v5 = vmul.f32 %v3108_v16, %v78_v63  ;;  %v1136_v13 = vmul.f32 %v3098_v11, %v81_v7  ;;  %s2909_s20 = scalar_lea.vmem %s2420_s12, 128 }
  0x34   :  { %1166 = vadd.xlane.f32.xlu1 %v1165_v27  ;;  %v1198_v1 = vsel %vm112_vm0, %v1132_v61, 0.0  ;;  %v1139_v19 = vmul.f32 %v3085_v4, %v84_v14  ;;  %v88_v27 = vld [vmem:[#allocation5 + $0xe0] sm:$0xff]  ;;  %v2967_v48 = vmov 0.0   ;;  %vm1447_vm11 = vcmask 1047559   ;;  %p2910_p2 = scmp.ne.s32.totalorder %s2420_s12, %s2909_s20  ;;  %p2915_p4 = scmp.lt.s32.totalorder %s2909_s20, %s2909_s20 }
  0x35   :  { %1154 = vadd.xlane.f32.xlu0 %v1153_v28  ;;  %v1201_v9 = vsel %vm112_vm0, %v1133_v5, 0.0  ;;  %v1210_v18 = vsel %vm112_vm0, %v1136_v13, 0.0  ;;  %v86_v28 = vld [vmem:[#allocation5 + $0xd0] sm:$0xff]  ;;  %2591 = vmatprep.mubr.msk.f32.mxu0 %vm2966_vm1, %v2967_v48  ;;  %vm186_vm12 = vcmask 130048  }
  0x36   :  { %2606 = vmatmul.mubr.msk.f32.gmra.mrb[2].mxu1 %vm112_vm0, %v63_v33  ;;  %v1219_v23 = vsel %vm112_vm0, %v1139_v19, 0.0  ;;  %v1141_v33 = vmul.f32 %v3108_v16, %v86_v28  ;;  %p2916_p5 = por %p2915_p4, %p2914_p3 }
  0x37   :  { %2608 = vmatprep.mubr.msk.f32.mxu1 %vm112_vm0, %v64_v2  ;;  %v1135_v2 = vmul.f32 %v3085_v4, %v80_v62 }
  0x38   :  { %1175 = vadd.xlane.f32.xlu1 %v1174_v34  ;;  %v87_v34 = vld [vmem:[#allocation5 + $0xd8] sm:$0xff]  ;;  %v1225_v37 = vsel %vm112_vm0, %v1141_v33, 0.0  ;;  %p2917_p6 = pnand %p2916_p5, %p2910_p2 }
  0x39   :  { %1172 = vadd.xlane.f32.xlu0 %v1171_v35  ;;  %v1207_v8 = vsel %vm112_vm0, %v1135_v2, 0.0  ;;  %v89_v35 = vld [vmem:[#allocation5 + $0xe8] sm:$0xff] }
  0x3a   :  { %2609 = vmatmul.mubr.msk.f32.gmra.mrb[4].mxu1 %vm112_vm0, %v65_v10  ;;  %v1134_v10 = vmul.f32 %v3128_v32, %v79_v6 }
  0x3b   :  { %2611 = vmatprep.mubr.msk.f32.mxu1 %vm112_vm0, %v66_v15  ;;  %v82_v15 = vld [vmem:[#allocation5 + $0xb0] sm:$0xff] }
  0x3c   :  { %1169 = vadd.xlane.f32.xlu1 %v1168_v40  ;;  %v1204_v17 = vsel %vm112_vm0, %v1134_v10, 0.0  ;;  %v1137_v20 = vmul.f32 %v3108_v16, %v82_v15  ;;  %v91_v40 = vld [vmem:[#allocation5 + $0xf8] sm:$0xff] }
  0x3d   :  { %1157 = vadd.xlane.f32.xlu0 %v1156_v41 }
  0x3e   :  { %2612 = vmatmul.mubr.msk.f32.gmra.mrb[6].mxu1 %vm112_vm0, %v67_v31  ;;  %v1213_v24 = vsel %vm112_vm0, %v1137_v20, 0.0  ;;  %v1143_v31 = vmul.f32 %v3085_v4, %v88_v27  ;;  %v90_v4 = vld [vmem:[#allocation5 + $0xf0] sm:$0xff] }
  0x3f   :  { %2614 = vmatprep.mubr.msk.f32.mxu1 %vm112_vm0, %v68_v26  ;;  %v1140_v26 = vmul.f32 %v3098_v11, %v85_v22  ;;  %v1145_v43 = vmul.f32 %v3108_v16, %v90_v4  ;;  %v59_v16 = vld [vmem:[#allocation2] sm:$0xff] }
  0x40   :  { %1184 = vadd.xlane.f32.xlu1 %v1183_v46  ;;  %v1231_v36 = vsel %vm112_vm0, %v1143_v31, 0.0 }
  0x41   :  { %1178 = vadd.xlane.f32.xlu0 %v1177_v47  ;;  %v1222_v30 = vsel %vm112_vm0, %v1140_v26, 0.0  ;;  %v2965_v47 = vmov 0.0|0.0  }
  0x42   :  { %2615 = vmatmul.mubr.msk.f32.gmra.mrb[8].mxu1 %vm112_vm0, %v69_v25  ;;  %v1138_v25 = vmul.f32 %v3128_v32, %v83_v21  ;;  %2738 = vmatprep.subr.bf16.mxu0 %v2965_v47 }
  0x43   :  { %2617 = vmatprep.mubr.msk.f32.mxu1 %vm112_vm0, %v70_v39  ;;  %v1144_v39 = vmul.f32 %v3098_v11, %v89_v35  ;;  %v1237_v11 = vsel %vm112_vm0, %v1145_v43, 0.0  ;;  %2740 = vmatpush3.bf16.msra.mxu0 %v3080_v3 }
  0x44   :  { %1181 = vadd.xlane.f32.xlu1 %v1180_v52  ;;  %v1216_v29 = vsel %vm112_vm0, %v1138_v25, 0.0  ;;  %2741 = vmatprep.subr.bf16.mxu0 %v2965_v47 }
  0x45   :  { %1187 = vadd.xlane.f32.xlu0 %v1186_v53  ;;  %v1234_v42 = vsel %vm112_vm0, %v1144_v39, 0.0 }
  0x46   :  { %2618 = vmatmul.mubr.msk.f32.gmra.mrb[10].mxu1 %vm112_vm0, %v71_v44  ;;  %v1146_v44 = vmul.f32 %v3128_v32, %v91_v40 }
  0x47   :  { %2620 = vmatprep.mubr.msk.f32.mxu1 %vm112_vm0, %v72_v38  ;;  %v1142_v38 = vmul.f32 %v3128_v32, %v87_v34  ;;  %v1453_v32 = vmul.f32 %v59_v16, %v59_v16  ;;  %2743 = vmatpush3.bf16.msra.mxu0 %v3102_v12 }
  0x48   :  { %1196 = vadd.xlane.f32.xlu1 %v1195_v58 }
  0x49   :  { %1190 = vadd.xlane.f32.xlu0 %v1189_v59  ;;  %v1228_v41 = vsel %vm112_vm0, %v1142_v38, 0.0  ;;  %v1454_v46 = vsel %vm112_vm0, %v1453_v32, 0.0 }
  0x4a   :  { %2621 = vmatmul.mubr.msk.f32.gmra.mrb[12].mxu1 %vm112_vm0, %v73_v45  ;;  %v1240_v45 = vsel %vm112_vm0, %v1146_v44, 0.0  ;;  %2592 = vmatmul.mubr.msk.f32.vlgmr.msra.gmra.mrb[0].mxu0 %vm112_vm0, %v59_v16 }
  0x4b   :  { %2623 = vmatprep.mubr.msk.f32.mxu1 %vm112_vm0, %v74_v51  ;;  %2658 = vmatprep.mubr.msk.f32.mxu0 %vm112_vm0, %v3217_v49 }
  0x4c   :  { %1193 = vadd.xlane.f32.xlu1 %v1192_v0  ;;  %v1275_v0 = vlaneseq }
  0x4d   :  { %1199 = vadd.xlane.f32.xlu0 %v1198_v1 }
  0x4e   :  { %2624 = vmatmul.mubr.msk.f32.gmra.mrb[14].mxu1 %vm112_vm0, %v75_v56  ;;  %v1276_v5 = vand.u32 127, %v1275_v0 }
  0x4f   :  { %2626 = vmatprep.mubr.msk.f32.mxu1 %vm112_vm0, %v76_v50 }
  0x50   :  { %1208 = vadd.xlane.f32.xlu1 %v1207_v8  ;;  %v1281_v8 = vadd.s32 4294967288, %v1276_v5  ;;  %v1288_v10 = vadd.s32 4294967280, %v1276_v5  ;;  %v1295_v13 = vadd.s32 4294967272, %v1276_v5 }
  0x51   :  { %1202 = vadd.xlane.f32.xlu0 %v1201_v9  ;;  %v3237_v9 = vshrl.u32 %v1275_v0, 7 }
  0x52   :  { %2627 = vmatmul.mubr.msk.f32.gmra.mrb[16].mxu1 %vm112_vm0, %v77_v57 }
  0x53   :  { %2629 = vmatprep.mubr.msk.f32.mxu1 %vm112_vm0, %v78_v63  ;;  %v3250_v19 = vsub.s32 %v1288_v10, %v3237_v9  ;;  %v3253_v20 = vsub.s32 %v1295_v13, %v3237_v9 }
  0x54   :  { %1205 = vadd.xlane.f32.xlu1 %v1204_v17  ;;  %v3244_v17 = vsub.s32 %v1281_v8, %v3237_v9 }
  0x55   :  { %1211 = vadd.xlane.f32.xlu0 %v1210_v18  ;;  %v3247_v18 = vsub.s32 %v1276_v5, %v3237_v9 }
  0x56   :  { %2630 = vmatmul.mubr.msk.f32.gmra.mrb[18].mxu1 %vm112_vm0, %v79_v6 }
  0x57   :  { %2632 = vmatprep.mubr.msk.f32.mxu1 %vm112_vm0, %v80_v62 }
  0x58   :  { %1220 = vadd.xlane.f32.xlu1 %v1219_v23 }
  0x59   :  { %1214 = vadd.xlane.f32.xlu0 %v1213_v24 }
  0x5a   :  { %2633 = vmatmul.mubr.msk.f32.gmra.mrb[20].mxu1 %vm112_vm0, %v81_v7 }
  0x5b   :  { %2635 = vmatprep.mubr.msk.f32.mxu1 %vm112_vm0, %v82_v15 }
  0x5c   :  { %1217 = vadd.xlane.f32.xlu1 %v1216_v29 }
  0x5d   :  { %1223 = vadd.xlane.f32.xlu0 %v1222_v30 }
  0x5e   :  { %2636 = vmatmul.mubr.msk.f32.gmra.mrb[22].mxu1 %vm112_vm0, %v83_v21 }
  0x5f   :  { %2638 = vmatprep.mubr.msk.f32.mxu1 %vm112_vm0, %v84_v14 }
  0x60   :  { %1232 = vadd.xlane.f32.xlu1 %v1231_v36 }
  0x61   :  { %1226 = vadd.xlane.f32.xlu0 %v1225_v37 }
  0x62   :  { %2639 = vmatmul.mubr.msk.f32.gmra.mrb[24].mxu1 %vm112_vm0, %v85_v22 }
  0x63   :  { %2641 = vmatprep.mubr.msk.f32.mxu1 %vm112_vm0, %v86_v28 }
  0x64   :  { %1229 = vadd.xlane.f32.xlu1 %v1228_v41 }
  0x65   :  { %1235 = vadd.xlane.f32.xlu0 %v1234_v42 }
  0x66   :  { %2642 = vmatmul.mubr.msk.f32.gmra.mrb[26].mxu1 %vm112_vm0, %v87_v34 }
  0x67   :  { %2644 = vmatprep.mubr.msk.f32.mxu1 %vm112_vm0, %v88_v27 }
  0x68   :  { %1241 = vadd.xlane.f32.xlu1 %v1240_v45 }
  0x69   :  { %1238 = vadd.xlane.f32.xlu0 %v1237_v11 }
  0x6a   :  { %2645 = vmatmul.mubr.msk.f32.gmra.mrb[28].mxu1 %vm112_vm0, %v89_v35 }
  0x6b   :  { %2647 = vmatprep.mubr.msk.f32.mxu1 %vm112_vm0, %v90_v4 }
  0x6c   :  { %1455 = vadd.xlane.f32.xlu1 %v1454_v46 }
  0x6e   :  { %2648 = vmatmul.mubr.msk.f32.gmra.mrb[30].mxu1 %vm112_vm0, %v91_v40 }
  0xb9   :  { %v1161_v50 = vpop.xlane.xlu1 %1160 }
  0xba   :  { %v1149_v51 = vpop.xlane.xlu0 %1148  ;;  %v1305_v25 = vrot.slane %v1161_v50, %v3247_v18 }
  0xbb   :  { %v1280_v26 = vrot.slane %v1149_v51, %v3247_v18 }
  0xbd   :  { %v1164_v52 = vpop.xlane.xlu1 %1163 }
  0xbe   :  { %v1152_v3 = vpop.xlane.xlu0 %1151  ;;  %v1309_v23 = vrot.slane %v1164_v52, %v3244_v17 }
  0xbf   :  { %v1285_v24 = vrot.slane %v1152_v3, %v3244_v17 }
  0xc0   :  { %v1310_v37 = vsel %vm1286_vm2, %v1309_v23, %v1305_v25 }
  0xc1   :  { %v1167_v53 = vpop.xlane.xlu1 %1166  ;;  %v1287_v38 = vsel %vm1286_vm2, %v1285_v24, %v1280_v26 }
  0xc2   :  { %v1155_v54 = vpop.xlane.xlu0 %1154  ;;  %v1314_v27 = vrot.slane %v1167_v53, %v3250_v19 }
  0xc3   :  { %v1292_v28 = vrot.slane %v1155_v54, %v3250_v19 }
  0xc4   :  { %v1315_v4 = vsel %vm1293_vm3, %v1314_v27, %v1310_v37 }
  0xc5   :  { %v1176_v12 = vpop.xlane.xlu1 %1175  ;;  %v1294_v40 = vsel %vm1293_vm3, %v1292_v28, %v1287_v38 }
  0xc6   :  { %v1173_v55 = vpop.xlane.xlu0 %1172  ;;  %v1328_v29 = vrot.slane %v1176_v12, %v3244_v17 }
  0xc7   :  { %v1324_v30 = vrot.slane %v1173_v55, %v3247_v18 }
  0xc9   :  { %v1170_v56 = vpop.xlane.xlu1 %1169  ;;  %v1329_v41 = vsel %vm1286_vm2, %v1328_v29, %v1324_v30 }
  0xca   :  { %v1158_v57 = vpop.xlane.xlu0 %1157  ;;  %v1319_v31 = vrot.slane %v1170_v56, %v3253_v20 }
  0xcb   :  { %v1299_v33 = vrot.slane %v1158_v57, %v3253_v20 }
  0xcc   :  { %v1320_v42 = vsel %vm1300_vm4, %v1319_v31, %v1315_v4 }
  0xcd   :  { %v3221_v58 = vpop.xlane.xlu1 %1184  ;;  %v1301_v43 = vsel %vm1300_vm4, %v1299_v33, %v1294_v40  ;;  %v2968_v40 = vmov 9  }
  0xce   :  { %v1179_v59 = vpop.xlane.xlu0 %1178  ;;  %v1343_v16 = vrot.slane %v3221_v58, %v3247_v18  ;;  %2849 = vset.pattern.permute.xlu1 %v2968_v40  ;;  %v2981_v40 = vmov 6  }
  0xcf   :  { %v1333_v36 = vrot.slane %v1179_v59, %v3250_v19 }
  0xd1   :  { %v1182_v60 = vpop.xlane.xlu1 %1181  ;;  %v1334_v32 = vsel %vm1293_vm3, %v1333_v36, %v1329_v41 }
  0xd2   :  { %v3223_v61 = vpop.xlane.xlu0 %1187  ;;  %v1338_v39 = vrot.slane %v1182_v60, %v3253_v20 }
  0xd3   :  { %v1347_v44 = vrot.slane %v3223_v61, %v3244_v17 }
  0xd4   :  { %v1339_v48 = vsel %vm1300_vm4, %v1338_v39, %v1334_v32 }
  0xd5   :  { %v3225_v62 = vpop.xlane.xlu1 %1196  ;;  %v1348_v55 = vsel %vm1286_vm2, %v1347_v44, %v1343_v16 }
  0xd6   :  { %v3227_v63 = vpop.xlane.xlu0 %1190  ;;  %v1362_v3 = vrot.slane %v3225_v62, %v3247_v18 }
  0xd7   :  { %v1352_v46 = vrot.slane %v3227_v63, %v3250_v19 }
  0xd9   :  { %v3229_v1 = vpop.xlane.xlu1 %1193  ;;  %v1353_v61 = vsel %vm1293_vm3, %v1352_v46, %v1348_v55 }
  0xda   :  { %v3231_v2 = vpop.xlane.xlu0 %1199  ;;  %v1357_v50 = vrot.slane %v3229_v1, %v3253_v20 }
  0xdb   :  { %v1366_v47 = vrot.slane %v3231_v2, %v3244_v17 }
  0xdc   :  { %v1358_v1 = vsel %vm1300_vm4, %v1357_v50, %v1353_v61 }
  0xdd   :  { %v3233_v6 = vpop.xlane.xlu1 %1208  ;;  %v1367_v62 = vsel %vm1286_vm2, %v1366_v47, %v1362_v3 }
  0xde   :  { %v3235_v7 = vpop.xlane.xlu0 %1202  ;;  %v1381_v56 = vrot.slane %v3233_v6, %v3247_v18 }
  0xdf   :  { %v1371_v51 = vrot.slane %v3235_v7, %v3250_v19  ;;  %v1436_v7 = vsel %vm1435_vm5, %v1320_v42, %v1301_v43  ;;  %v3338_v42 = vld [vmem:[%s3881_s2 + $0x8] sm:$0xff]  ;;  %v2969_v43 = vmov 1  }
  0xe0   :  { %2848 = vset.pattern.permute.xlu0 %v2969_v43  ;;  %v2983_v43 = vmov 0  }
  0xe1   :  { %v3239_v14 = vpop.xlane.xlu1 %1205  ;;  %v1372_v2 = vsel %vm1293_vm3, %v1371_v51, %v1367_v62 }
  0xe2   :  { %v3241_v15 = vpop.xlane.xlu0 %1211  ;;  %v1376_v53 = vrot.slane %v3239_v14, %v3253_v20  ;;  %v1438_v14 = vsel %vm1437_vm6, %v1339_v48, %v1436_v7 }
  0xe3   :  { %v1385_v52 = vrot.slane %v3241_v15, %v3244_v17 }
  0xe4   :  { %v1377_v8 = vsel %vm1300_vm4, %v1376_v53, %v1372_v2 }
  0xe5   :  { %v3255_v21 = vpop.xlane.xlu1 %1220  ;;  %v1386_v5 = vsel %vm1286_vm2, %v1385_v52, %v1381_v56 }
  0xe6   :  { %v3257_v22 = vpop.xlane.xlu0 %1214  ;;  %v1400_v63 = vrot.slane %v3255_v21, %v3247_v18 }
  0xe7   :  { %v1390_v54 = vrot.slane %v3257_v22, %v3250_v19 }
  0xe9   :  { %v1218_v34 = vpop.xlane.xlu1 %1217  ;;  %v1391_v10 = vsel %vm1293_vm3, %v1390_v54, %v1386_v5 }
  0xea   :  { %v1224_v35 = vpop.xlane.xlu0 %1223  ;;  %v1395_v57 = vrot.slane %v1218_v34, %v3253_v20 }
  0xeb   :  { %v1404_v12 = vrot.slane %v1224_v35, %v3244_v17 }
  0xec   :  { %v1396_v15 = vsel %vm1300_vm4, %v1395_v57, %v1391_v10 }
  0xed   :  { %v1233_v11 = vpop.xlane.xlu1 %1232  ;;  %v1405_v13 = vsel %vm1286_vm2, %v1404_v12, %v1400_v63 }
  0xee   :  { %v1227_v45 = vpop.xlane.xlu0 %1226  ;;  %v1419_v21 = vrot.slane %v1233_v11, %v3247_v18 }
  0xef   :  { %v1409_v58 = vrot.slane %v1227_v45, %v3250_v19 }
  0xf1   :  { %v1230_v59 = vpop.xlane.xlu1 %1229  ;;  %v1410_v22 = vsel %vm1293_vm3, %v1409_v58, %v1405_v13 }
  0xf2   :  { %v1236_v60 = vpop.xlane.xlu0 %1235  ;;  %v1414_v0 = vrot.slane %v1230_v59, %v3253_v20 }
  0xf3   :  { %v1423_v6 = vrot.slane %v1236_v60, %v3244_v17  ;;  %v1440_v17 = vsel %vm1439_vm7, %v1358_v1, %v1438_v14 }
  0xf4   :  { %v1415_v25 = vsel %vm1300_vm4, %v1414_v0, %v1410_v22  ;;  %v1442_v28 = vsel %vm1441_vm8, %v1377_v8, %v1440_v17 }
  0xf5   :  { %v1242_v24 = vpop.xlane.xlu1 %1241  ;;  %v1424_v29 = vsel %vm1286_vm2, %v1423_v6, %v1419_v21  ;;  %v1444_v18 = vsel %vm1443_vm9, %v1396_v15, %v1442_v28 }
  0xf6   :  { %v1239_v23 = vpop.xlane.xlu0 %1238  ;;  %v1433_v27 = vrot.slane %v1242_v24, %v3253_v20  ;;  %v1446_v33 = vsel %vm1445_vm10, %v1415_v25, %v1444_v18 }
  0xf7   :  { %v1428_v26 = vrot.slane %v1239_v23, %v3250_v19 }
  0xf9   :  { %v1429_v30 = vsel %vm1293_vm3, %v1428_v26, %v1424_v29  ;;  %v2493_v29 = vld [vmem:[%s3884_s5] ss:$0 sm:$0xff] }
  0xfa   :  { %v1434_v31 = vsel %vm1300_vm4, %v1433_v27, %v1429_v30  ;;  %v1456_v27 = vpop.xlane.xlu1 %1455 }
  0xfb   :  { %v1448_v34 = vsel %vm1447_vm11, %v1434_v31, %v1446_v33  ;;  %v2970_v31 = vmov 2   ;;  %v2972_v33 = vmov 10  }
  0xfc   :  { %v1450_v35 = vsel %vm112_vm0, %v1448_v34, 0.0  ;;  %v2973_v34 = vmov 7  }
  0xfd   :  { %1451 = vadd.xlane.f32.xlu0 %v1450_v35  ;;  %v2974_v35 = vmov 3  }
 0x105   :  { %v2604_v19 = vpop.f32.mrb[0].mxu1 }
 0x106   :  { %v350_v20 = vpop.f32.mrb[1].mxu1 }
 0x107   :  { %v2752_v36 = vpack.c.bf16 %v2604_v19, %v350_v20  ;;  %v2975_v19 = vmov 8   ;;  %v2976_v20 = vmov 11  }
 0x109   :  { %v2607_v37 = vpop.f32.mrb[2].mxu1  ;;  %2753 = vmatprep.subr.bf16.mxu0 %v2752_v36 }
 0x10a   :  { %v360_v38 = vpop.f32.mrb[3].mxu1  ;;  %2755 = vmatpush3.bf16.msra.mxu0 %v2752_v36  ;;  %v2977_v36 = vmov 15  }
 0x10b   :  { %v2756_v39 = vpack.c.bf16 %v2607_v37, %v360_v38  ;;  %v2978_v37 = vmov 4   ;;  %v2979_v38 = vmov 12  }
 0x10d   :  { %v2610_v4 = vpop.f32.mrb[4].mxu1  ;;  %2757 = vmatprep.subr.bf16.mxu0 %v2756_v39 }
 0x10e   :  { %v370_v41 = vpop.f32.mrb[5].mxu1  ;;  %2759 = vmatpush3.bf16.msra.mxu0 %v2756_v39  ;;  %v2980_v39 = vmov 5  }
 0x10f   :  { %v2760_v44 = vpack.c.bf16 %v2610_v4, %v370_v41  ;;  %v2443_v4 = vld [vmem:[%s3883_s4] ss:$0 sm:$0xff] }
 0x111   :  { %v2613_v11 = vpop.f32.mrb[6].mxu1  ;;  %2761 = vmatprep.subr.bf16.mxu0 %v2760_v44  ;;  %2659 = vmatmul.mubr.msk.f32.vlgmr.msra.gmra.mrb[2].mxu0 %vm112_vm0, %v3338_v42 }
 0x112   :  { %v380_v45 = vpop.f32.mrb[7].mxu1  ;;  %2763 = vmatpush3.bf16.msra.mxu0 %v2760_v44  ;;  %2669 = vmatprep.mubr.msk.f32.mxu0 %vm112_vm0, %v3217_v49 }
 0x113   :  { %v2764_v16 = vpack.c.bf16 %v2613_v11, %v380_v45 }
 0x115   :  { %v2616_v32 = vpop.f32.mrb[8].mxu1  ;;  %2765 = vmatprep.subr.bf16.mxu0 %v2764_v16 }
 0x116   :  { %v390_v46 = vpop.f32.mrb[9].mxu1  ;;  %2767 = vmatpush3.bf16.msra.mxu0 %v2764_v16 }
 0x117   :  { %v2768_v47 = vpack.c.bf16 %v2616_v32, %v390_v46 }
 0x119   :  { %v2619_v48 = vpop.f32.mrb[10].mxu1  ;;  %2769 = vmatprep.subr.bf16.mxu0 %v2768_v47  ;;  %2670 = vmatmul.mubr.msk.f32.vlgmr.msra.gmra.mrb[4].mxu0 %vm112_vm0, %v3338_v42 }
 0x11a   :  { %v400_v50 = vpop.f32.mrb[11].mxu1  ;;  %2771 = vmatpush3.bf16.msra.mxu0 %v2768_v47  ;;  %2680 = vmatprep.mubr.msk.f32.mxu0 %vm112_vm0, %v3217_v49 }
 0x11b   :  { %v2772_v51 = vpack.c.bf16 %v2619_v48, %v400_v50 }
 0x11d   :  { %v2622_v52 = vpop.f32.mrb[12].mxu1  ;;  %2773 = vmatprep.subr.bf16.mxu0 %v2772_v51  ;;  %v182_v25 = vpop.f32.mrb[0].mxu0 }
 0x11e   :  { %v410_v3 = vpop.f32.mrb[13].mxu1  ;;  %2775 = vmatpush3.bf16.msra.mxu0 %v2772_v51  ;;  %v2593_v26 = vpop.f32.mrb[1].mxu0  ;;  %v183_v41 = vadd.f32 %v2443_v4, %v182_v25 }
 0x11f   :  { %v2776_v53 = vpack.c.bf16 %v2622_v52, %v410_v3  ;;  %v1529_v52 = vsub.s32 1, %v3237_v9  ;;  %v105_v3 = vld [vmem:[%s3886_s7 + $0x8] sm:$0xff] }
 0x120   :  { %187 = vst.msk [vmem:[#allocation7] sm:$0xff] %vm186_vm12, %v183_v41 }
 0x121   :  { %v2625_v54 = vpop.f32.mrb[14].mxu1  ;;  %2777 = vmatprep.subr.bf16.mxu0 %v2776_v53  ;;  %2681 = vmatmul.mubr.msk.f32.vlgmr.msra.gmra.mrb[6].mxu0 %vm112_vm0, %v3338_v42 }
 0x122   :  { %v420_v12 = vpop.f32.mrb[15].mxu1  ;;  %2779 = vmatpush3.bf16.msra.mxu0 %v2776_v53  ;;  %2691 = vmatprep.mubr.msk.f32.mxu0 %vm112_vm0, %v3217_v49  ;;  %v104_v53 = vld [vmem:[%s3886_s7] sm:$0xff]  ;;  %s2984_s7 = smov 16  }
 0x123   :  { %v2780_v55 = vpack.c.bf16 %v2625_v54, %v420_v12  ;;  %v1589_v54 = vsub.s32 2, %v3237_v9  ;;  %v1769_v12 = vsub.s32 5, %v3237_v9 }
 0x125   :  { %v2628_v56 = vpop.f32.mrb[16].mxu1  ;;  %2781 = vmatprep.subr.bf16.mxu0 %v2780_v55 }
 0x126   :  { %v430_v57 = vpop.f32.mrb[17].mxu1  ;;  %2783 = vmatpush3.bf16.msra.mxu0 %v2780_v55  ;;  %v1889_v55 = vsub.s32 7, %v3237_v9 }
 0x127   :  { %v2784_v58 = vpack.c.bf16 %v2628_v56, %v430_v57  ;;  %v1649_v56 = vsub.s32 3, %v3237_v9  ;;  %v1472_v57 = vsub.s32 0, %v3237_v9 }
 0x129   :  { %v2631_v59 = vpop.f32.mrb[18].mxu1  ;;  %2785 = vmatprep.subr.bf16.mxu0 %v2784_v58  ;;  %2692 = vmatmul.mubr.msk.f32.vlgmr.msra.gmra.mrb[8].mxu0 %vm112_vm0, %v3338_v42 }
 0x12a   :  { %v440_v60 = vpop.f32.mrb[19].mxu1  ;;  %2787 = vmatpush3.bf16.msra.mxu0 %v2784_v58  ;;  %2702 = vmatprep.mubr.msk.f32.mxu0 %vm112_vm0, %v3217_v49  ;;  %v2007_v58 = vrot.slane %v105_v3, %v1529_v52 }
 0x12b   :  { %v2788_v61 = vpack.c.bf16 %v2631_v59, %v440_v60  ;;  %v1709_v59 = vsub.s32 4, %v3237_v9  ;;  %v1530_v60 = vrot.slane %v104_v53, %v1529_v52 }
 0x12d   :  { %v2634_v62 = vpop.f32.mrb[20].mxu1  ;;  %2789 = vmatprep.subr.bf16.mxu0 %v2788_v61 }
 0x12e   :  { %v450_v63 = vpop.f32.mrb[21].mxu1  ;;  %2791 = vmatpush3.bf16.msra.mxu0 %v2788_v61  ;;  %v1829_v61 = vsub.s32 6, %v3237_v9  ;;  %v3425_v9 = vrot.slane %v105_v3, %v1709_v59 }
 0x12f   :  { %v2792_v0 = vpack.c.bf16 %v2634_v62, %v450_v63  ;;  %v1590_v63 = vrot.slane %v104_v53, %v1589_v54 }
 0x131   :  { %v2637_v1 = vpop.f32.mrb[22].mxu1  ;;  %2793 = vmatprep.subr.bf16.mxu0 %v2792_v0  ;;  %2703 = vmatmul.mubr.msk.f32.vlgmr.msra.gmra.mrb[10].mxu0 %vm112_vm0, %v3338_v42 }
 0x132   :  { %v460_v2 = vpop.f32.mrb[23].mxu1  ;;  %2795 = vmatpush3.bf16.msra.mxu0 %v2792_v0  ;;  %2713 = vmatprep.mubr.msk.f32.mxu0 %vm112_vm0, %v3217_v49  ;;  %v2243_v0 = vrot.slane %v105_v3, %v1769_v12 }
 0x133   :  { %v2796_v5 = vpack.c.bf16 %v2637_v1, %v460_v2  ;;  %v2066_v1 = vrot.slane %v105_v3, %v1589_v54 }
 0x135   :  { %v2640_v6 = vpop.f32.mrb[24].mxu1  ;;  %2797 = vmatprep.subr.bf16.mxu0 %v2796_v5 }
 0x136   :  { %v470_v7 = vpop.f32.mrb[25].mxu1  ;;  %2799 = vmatpush3.bf16.msra.mxu0 %v2796_v5 }
 0x137   :  { %v2800_v8 = vpack.c.bf16 %v2640_v6, %v470_v7  ;;  %v1890_v6 = vrot.slane %v104_v53, %v1889_v55  ;;  %v3413_v7 = vrot.slane %v104_v53, %v1649_v56 }
 0x139   :  { %v2643_v10 = vpop.f32.mrb[26].mxu1  ;;  %2801 = vmatprep.subr.bf16.mxu0 %v2800_v8  ;;  %2714 = vmatmul.mubr.msk.f32.vlgmr.msra.gmra.mrb[12].mxu0 %vm112_vm0, %v3338_v42 }
 0x13a   :  { %v480_v13 = vpop.f32.mrb[27].mxu1  ;;  %2803 = vmatpush3.bf16.msra.mxu0 %v2800_v8  ;;  %2724 = vmatprep.mubr.msk.f32.mxu0 %vm112_vm0, %v3217_v49  ;;  %v3415_v8 = vrot.slane %v105_v3, %v1472_v57 }
 0x13b   :  { %v2804_v14 = vpack.c.bf16 %v2643_v10, %v480_v13  ;;  %v3417_v10 = vrot.slane %v105_v3, %v1649_v56 }
 0x13d   :  { %v2646_v15 = vpop.f32.mrb[28].mxu1  ;;  %2805 = vmatprep.subr.bf16.mxu0 %v2804_v14 }
 0x13e   :  { %v490_v21 = vpop.f32.mrb[29].mxu1  ;;  %2807 = vmatpush3.bf16.msra.mxu0 %v2804_v14 }
 0x13f   :  { %v2808_v22 = vpack.c.bf16 %v2646_v15, %v490_v21  ;;  %v3423_v15 = vrot.slane %v104_v53, %v1709_v59  ;;  %v3427_v21 = vrot.slane %v104_v53, %v1769_v12 }
 0x141   :  { %v2649_v23 = vpop.f32.mrb[30].mxu1  ;;  %2725 = vmatmul.mubr.msk.f32.vlgmr.msra.gmra.mrb[14].mxu0 %vm112_vm0, %v3338_v42  ;;  %2809 = vmatprep.subr.bf16.mxu0 %v2808_v22 }
 0x142   :  { %v500_v24 = vpop.f32.mrb[31].mxu1  ;;  %2811 = vmatpush3.bf16.msra.mxu0 %v2808_v22  ;;  %2735 = vmatprep.mubr.msk.f32.mxu0 %vm112_vm0, %v3217_v49  ;;  %v2971_v49 = vmov 13  }
 0x143   :  { %v2812_v17 = vpack.c.bf16 %v2649_v23, %v500_v24  ;;  %v3431_v23 = vrot.slane %v104_v53, %v1829_v61  ;;  %v3433_v24 = vrot.slane %v105_v3, %v1829_v61 }
 0x145   :  { %2813 = vmatprep.subr.bf16.mxu0 %v2812_v17 }
 0x146   :  { %2815 = vmatpush3.bf16.msra.mxu0 %v2812_v17  ;;  %v3435_v17 = vrot.slane %v105_v3, %v1889_v55 }
 0x149   :  { %2736 = vmatmul.mubr.msk.f32.vlgmr.msra.gmra.mrb[16].mxu0 %vm112_vm0, %v3338_v42  ;;  %v2982_v42 = vmov 14  }
 0x18a   :  { %v1452_v28 = vpop.xlane.xlu0 %1451 }
 0x18b   :  { %v1457_v30 = vadd.f32 %v1456_v27, %v1452_v28 }
 0x18d   :  { %v1464_v18 = vmul.f32 %v2493_v29, %v1457_v30 }
 0x18f   :  { %2001 = vperm.xlu1 %2849, %v1464_v18   ;;  %1524 = vperm.xlu0 %2848, %v1464_v18  }
 0x193   :  { %2850 = vset.pattern.permute.xlu1 %v2970_v31  ;;  %2857 = vset.pattern.permute.xlu0 %v2971_v49  ;;  %v3444_v31 = vrot.slane %v104_v53, %v1472_v57 }
 0x194   :  { %1584 = vperm.xlu1 %2850, %v1464_v18   ;;  %2237 = vperm.xlu0 %2857, %v1464_v18  }
 0x198   :  { %2851 = vset.pattern.permute.xlu1 %v2972_v33  ;;  %2860 = vset.pattern.permute.xlu0 %v2973_v34 }
 0x199   :  { %2060 = vperm.xlu1 %2851, %v1464_v18   ;;  %1884 = vperm.xlu0 %2860, %v1464_v18  }
 0x19d   :  { %2852 = vset.pattern.permute.xlu1 %v2974_v35  ;;  %2863 = vset.pattern.permute.xlu0 %v2975_v19 }
 0x19e   :  { %1644 = vperm.xlu1 %2852, %v1464_v18   ;;  %1944 = vperm.xlu0 %2863, %v1464_v18  }
 0x1a2   :  { %2853 = vset.pattern.permute.xlu1 %v2976_v20  ;;  %2864 = vset.pattern.permute.xlu0 %v2977_v36 }
 0x1a3   :  { %2119 = vperm.xlu1 %2853, %v1464_v18  }
 0x1a7   :  { %2854 = vset.pattern.permute.xlu1 %v2978_v37 }
 0x1a8   :  { %1704 = vperm.xlu1 %2854, %v1464_v18  }
 0x1ac   :  { %2855 = vset.pattern.permute.xlu1 %v2979_v38 }
 0x1ad   :  { %2178 = vperm.xlu1 %2855, %v1464_v18  }
 0x1b1   :  { %2856 = vset.pattern.permute.xlu1 %v2980_v39 }
 0x1b2   :  { %1764 = vperm.xlu1 %2856, %v1464_v18  }
 0x1b6   :  { %2858 = vset.pattern.permute.xlu1 %v2981_v40 }
 0x1b7   :  { %1824 = vperm.xlu1 %2858, %v1464_v18  }
 0x1bb   :  { %2859 = vset.pattern.permute.xlu1 %v2982_v42 }
 0x1bc   :  { %2296 = vperm.xlu1 %2859, %v1464_v18  }
 0x1c0   :  { %2861 = vset.pattern.permute.xlu1 %v2977_v36 }
 0x1c1   :  { %2355 = vperm.xlu1 %2861, %v1464_v18  }
 0x1c5   :  { %2862 = vset.pattern.permute.xlu1 %v2983_v43 }
 0x1c6   :  { %1467 = vperm.xlu1 %2862, %v1464_v18  }
 0x1e4   :  { %v3377_v44 = vpop.f32.mrb[2].mxu0 }
 0x1e5   :  { %v3379_v11 = vpop.f32.mrb[3].mxu0 }
 0x1ec   :  { %v3381_v45 = vpop.f32.mrb[4].mxu0 }
 0x1ed   :  { %v3383_v16 = vpop.f32.mrb[5].mxu0 }
 0x1f4   :  { %v3385_v32 = vpop.f32.mrb[6].mxu0 }
 0x1f5   :  { %v3387_v46 = vpop.f32.mrb[7].mxu0 }
 0x1fc   :  { %v3389_v47 = vpop.f32.mrb[8].mxu0 }
 0x1fd   :  { %v3391_v48 = vpop.f32.mrb[9].mxu0 }
 0x204   :  { %v3393_v50 = vpop.f32.mrb[10].mxu0 }
 0x205   :  { %v3395_v51 = vpop.f32.mrb[11].mxu0 }
 0x20c   :  { %v3411_v62 = vpop.f32.mrb[12].mxu0 }
 0x20d   :  { %v3421_v14 = vpop.f32.mrb[13].mxu0 }
 0x20e   :  { %v2002_v2 = vpop.permute.xlu1 %2001  ;;  %v1525_v5 = vpop.permute.xlu0 %1524 }
 0x20f   :  { %v3419_v13 = vmul.f32 %v2007_v58, %v2002_v2  ;;  %v3429_v22 = vmul.f32 %v1530_v60, %v1525_v5 }
 0x211   :  { %v2010_v25 = vrot.slane %v3419_v13, 7  ;;  %v2011_v26 = vrot.slane %v3419_v13, 1  ;;  %v2012_v27 = vrot.slane %v3419_v13, 2  ;;  %v2013_v28 = vrot.slane %v3419_v13, 3 }
 0x212   :  { %v2014_v29 = vrot.slane %v3419_v13, 4  ;;  %v2015_v30 = vrot.slane %v3419_v13, 5  ;;  %v2016_v18 = vrot.slane %v3419_v13, 6  ;;  %v2026_v38 = vadd.f32 %v3381_v45, %v3419_v13 }
 0x213   :  { %v1585_v49 = vpop.permute.xlu1 %1584  ;;  %v2238_v33 = vpop.permute.xlu0 %2237  ;;  %v2025_v34 = vadd.f32 %v3377_v44, %v2010_v25  ;;  %v2027_v35 = vadd.f32 %v3385_v32, %v2011_v26  ;;  %v2028_v19 = vadd.f32 %v3389_v47, %v2012_v27  ;;  %v2029_v20 = vadd.f32 %v3393_v50, %v2013_v28 }
 0x214   :  { %v1591_v36 = vmul.f32 %v1590_v63, %v1585_v49  ;;  %v3450_v37 = vmul.f32 %v2243_v0, %v2238_v33  ;;  %v2030_v39 = vadd.f32 %v3411_v62, %v2014_v29  ;;  %v3455_v4 = vpop.f32.mrb[14].mxu0  ;;  %v1533_v43 = vrot.slane %v3429_v22, 7 }
 0x215   :  { %v2041_v40 = vrot.slane %v2025_v34, 1  ;;  %v2043_v41 = vrot.slane %v2027_v35, 7  ;;  %v2045_v42 = vrot.slane %v2028_v19, 6  ;;  %v3458_v52 = vpop.f32.mrb[15].mxu0  ;;  %v2031_v3 = vadd.f32 %v3455_v4, %v2015_v30 }
 0x216   :  { %v2047_v53 = vrot.slane %v2029_v20, 5  ;;  %v1593_v54 = vrot.slane %v1591_v36, 6  ;;  %v1594_v12 = vrot.slane %v1591_v36, 7  ;;  %v1595_v56 = vrot.slane %v1591_v36, 1 }
 0x217   :  { %v2042_v55 = vsel %vm1435_vm5, %v2026_v38, %v2041_v40  ;;  %v1596_v57 = vrot.slane %v1591_v36, 2  ;;  %v1597_v58 = vrot.slane %v1591_v36, 3  ;;  %v2049_v63 = vrot.slane %v2030_v39, 4 }
 0x218   :  { %v2061_v59 = vpop.permute.xlu1 %2060  ;;  %v1885_v60 = vpop.permute.xlu0 %1884  ;;  %v2044_v61 = vsel %vm1437_vm6, %v2043_v41, %v2042_v55  ;;  %v2051_v0 = vrot.slane %v2031_v3, 3  ;;  %v1598_v2 = vrot.slane %v1591_v36, 4  ;;  %v1599_v25 = vrot.slane %v1591_v36, 5 }
 0x219   :  { %v2067_v5 = vmul.f32 %v2066_v1, %v2061_v59  ;;  %v2046_v13 = vsel %vm1439_vm7, %v2045_v42, %v2044_v61  ;;  %v1608_v26 = vadd.f32 %v1593_v54, %v3379_v11  ;;  %v3465_v27 = vmul.f32 %v1890_v6, %v1885_v60 }
 0x21a   :  { %v2048_v28 = vsel %vm1441_vm8, %v2047_v53, %v2046_v13  ;;  %v1609_v29 = vadd.f32 %v1594_v12, %v3383_v16  ;;  %v1611_v30 = vadd.f32 %v1595_v56, %v3391_v48  ;;  %v1612_v33 = vadd.f32 %v1596_v57, %v3395_v51 }
 0x21b   :  { %v2050_v49 = vsel %vm1443_vm9, %v2049_v63, %v2048_v28  ;;  %v1613_v34 = vadd.f32 %v1597_v58, %v3421_v14  ;;  %v1614_v1 = vadd.f32 %v1598_v2, %v3458_v52  ;;  %v1610_v19 = vadd.f32 %v1591_v36, %v3387_v46 }
 0x21c   :  { %v2052_v35 = vsel %vm1445_vm10, %v2051_v0, %v2050_v49  ;;  %v1624_v6 = vrot.slane %v1608_v26, 2  ;;  %v1625_v20 = vrot.slane %v1609_v29, 1  ;;  %v1628_v39 = vrot.slane %v1611_v30, 7  ;;  %v3479_v54 = vpop.f32.mrb[16].mxu0 }
 0x21d   :  { %v1645_v38 = vpop.permute.xlu1 %1644  ;;  %v1630_v40 = vrot.slane %v1612_v33, 6  ;;  %v1632_v41 = vrot.slane %v1613_v34, 5  ;;  %v2069_v42 = vrot.slane %v2067_v5, 6  ;;  %v1945_v53 = vpop.permute.xlu0 %1944  ;;  %v1634_v55 = vrot.slane %v1614_v1, 4 }
 0x21e   :  { %v3477_v3 = vmul.f32 %v3413_v7, %v1645_v38  ;;  %v1626_v12 = vsel %vm1435_vm5, %v1625_v20, %v1624_v6  ;;  %v2070_v56 = vrot.slane %v2067_v5, 7  ;;  %v3482_v57 = vpop.f32.mrb[17].mxu0  ;;  %v2032_v36 = vadd.f32 %v3479_v54, %v2016_v18 }
 0x21f   :  { %v1627_v58 = vsel %vm1437_vm6, %v1610_v19, %v1626_v12  ;;  %v2071_v59 = vrot.slane %v2067_v5, 1  ;;  %v2072_v60 = vrot.slane %v2067_v5, 2  ;;  %v1615_v61 = vadd.f32 %v1599_v25, %v3482_v57 }
 0x220   :  { %v1629_v7 = vsel %vm1439_vm7, %v1628_v39, %v1627_v58  ;;  %v2073_v63 = vrot.slane %v2067_v5, 3  ;;  %v2074_v0 = vrot.slane %v2067_v5, 4  ;;  %v3489_v2 = vmul.f32 %v3415_v8, %v1945_v53 }
 0x221   :  { %v2053_v13 = vrot.slane %v2032_v36, 2  ;;  %v1631_v26 = vsel %vm1441_vm8, %v1630_v40, %v1629_v7  ;;  %v2084_v28 = vadd.f32 %v3377_v44, %v2069_v42  ;;  %v1636_v30 = vrot.slane %v1615_v61, 3 }
 0x222   :  { %v2120_v29 = vpop.permute.xlu1 %2119  ;;  %v1633_v18 = vsel %vm1443_vm9, %v1632_v41, %v1631_v26  ;;  %v2075_v49 = vrot.slane %v2067_v5, 5  ;;  %v2085_v33 = vadd.f32 %v3381_v45, %v2070_v56  ;;  %v2086_v1 = vadd.f32 %v3385_v32, %v2067_v5 }
 0x223   :  { %v2054_v25 = vsel %vm1447_vm11, %v2053_v13, %v2052_v35  ;;  %v1635_v34 = vsel %vm1445_vm10, %v1634_v55, %v1633_v18  ;;  %v2087_v8 = vadd.f32 %v3389_v47, %v2071_v59  ;;  %v2088_v6 = vadd.f32 %v3393_v50, %v2072_v60 }
 0x224   :  { %2055 = vrot.lane.b32.xlu1 %v2054_v25, %s2984_s7  ;;  %v1637_v19 = vsel %vm1447_vm11, %v1636_v30, %v1635_v34  ;;  %v2089_v20 = vadd.f32 %v3411_v62, %v2073_v63  ;;  %v2090_v38 = vadd.f32 %v3455_v4, %v2074_v0  ;;  %v3505_v39 = vmul.f32 %v3417_v10, %v2120_v29 }
 0x225   :  { %1638 = vrot.lane.b32.xlu0 %v1637_v19, %s2985_s14  ;;  %v2091_v5 = vadd.f32 %v3479_v54, %v2075_v49  ;;  %v2100_v35 = vrot.slane %v2084_v28, 2  ;;  %v2101_v40 = vrot.slane %v2085_v33, 1  ;;  %v2104_v41 = vrot.slane %v2087_v8, 7 }
 0x226   :  { %v2106_v42 = vrot.slane %v2088_v6, 6  ;;  %v2108_v53 = vrot.slane %v2089_v20, 5  ;;  %v1653_v12 = vrot.slane %v3477_v3, 5  ;;  %v2110_v36 = vrot.slane %v2090_v38, 4 }
 0x227   :  { %v1705_v55 = vpop.permute.xlu1 %1704  ;;  %v2102_v56 = vsel %vm1435_vm5, %v2101_v40, %v2100_v35  ;;  %v1654_v58 = vrot.slane %v3477_v3, 6  ;;  %v1655_v10 = vrot.slane %v3477_v3, 7  ;;  %v2112_v60 = vrot.slane %v2091_v5, 3 }
 0x228   :  { %v2103_v59 = vsel %vm1437_vm6, %v2086_v1, %v2102_v56  ;;  %v1656_v61 = vrot.slane %v3477_v3, 1  ;;  %v1657_v7 = vrot.slane %v3477_v3, 2  ;;  %v1658_v0 = vrot.slane %v3477_v3, 3 }
 0x229   :  { %v2105_v63 = vsel %vm1439_vm7, %v2104_v41, %v2103_v59  ;;  %v1659_v13 = vrot.slane %v3477_v3, 4  ;;  %v1668_v26 = vadd.f32 %v1653_v12, %v3379_v11  ;;  %v3521_v28 = vmul.f32 %v3423_v15, %v1705_v55 }
 0x22a   :  { %v2107_v29 = vsel %vm1441_vm8, %v2106_v42, %v2105_v63  ;;  %v1669_v18 = vadd.f32 %v1654_v58, %v3383_v16  ;;  %v1670_v30 = vadd.f32 %v1655_v10, %v3387_v46  ;;  %v1672_v33 = vadd.f32 %v1656_v61, %v3395_v51 }
 0x22b   :  { %v2109_v49 = vsel %vm1443_vm9, %v2108_v53, %v2107_v29  ;;  %v1673_v25 = vadd.f32 %v1657_v7, %v3421_v14  ;;  %v1674_v34 = vadd.f32 %v1658_v0, %v3458_v52  ;;  %v1671_v15 = vadd.f32 %v3477_v3, %v3391_v48 }
 0x22c   :  { %v2111_v1 = vsel %vm1445_vm10, %v2110_v36, %v2109_v49  ;;  %v2179_v8 = vpop.permute.xlu1 %2178  ;;  %v1684_v19 = vrot.slane %v1668_v26, 3  ;;  %v1685_v6 = vrot.slane %v1669_v18, 2  ;;  %v1675_v5 = vadd.f32 %v1659_v13, %v3482_v57 }
 0x22d   :  { %v2113_v20 = vsel %vm1447_vm11, %v2112_v60, %v2111_v1  ;;  %v3535_v38 = vmul.f32 %v3425_v9, %v2179_v8  ;;  %v1687_v35 = vrot.slane %v1670_v30, 1  ;;  %v1690_v41 = vrot.slane %v1672_v33, 7 }
 0x22e   :  { %2114 = vrot.lane.b32.xlu1 %v2113_v20, %s2985_s14  ;;  %v1686_v40 = vsel %vm1435_vm5, %v1685_v6, %v1684_v19  ;;  %v1692_v42 = vrot.slane %v1673_v25, 6  ;;  %v1694_v53 = vrot.slane %v1674_v34, 5  ;;  %v2128_v3 = vrot.slane %v3505_v39, 5 }
 0x22f   :  { %v1688_v12 = vsel %vm1437_vm6, %v1687_v35, %v1686_v40  ;;  %v2129_v55 = vrot.slane %v3505_v39, 6  ;;  %v2130_v56 = vrot.slane %v3505_v39, 7  ;;  %v2131_v36 = vrot.slane %v3505_v39, 1 }
 0x230   :  { %v1689_v9 = vsel %vm1439_vm7, %v1671_v15, %v1688_v12  ;;  %v2132_v58 = vrot.slane %v3505_v39, 2  ;;  %v2133_v10 = vrot.slane %v3505_v39, 3  ;;  %v2134_v61 = vrot.slane %v3505_v39, 4 }
 0x231   :  { %v1691_v59 = vsel %vm1441_vm8, %v1690_v41, %v1689_v9  ;;  %v1765_v60 = vpop.permute.xlu1 %1764  ;;  %v2143_v7 = vadd.f32 %v3377_v44, %v2128_v3  ;;  %v2144_v63 = vadd.f32 %v3381_v45, %v2129_v55  ;;  %v1696_v13 = vrot.slane %v1675_v5, 4 }
 0x232   :  { %v1693_v0 = vsel %vm1443_vm9, %v1692_v42, %v1691_v59  ;;  %v3554_v26 = vmul.f32 %v3427_v21, %v1765_v60  ;;  %v2145_v29 = vadd.f32 %v3385_v32, %v2130_v56  ;;  %v2147_v30 = vadd.f32 %v3393_v50, %v2131_v36 }
 0x233   :  { %v1695_v18 = vsel %vm1445_vm10, %v1694_v53, %v1693_v0  ;;  %v2148_v49 = vadd.f32 %v3411_v62, %v2132_v58  ;;  %v2149_v33 = vadd.f32 %v3455_v4, %v2133_v10  ;;  %v2150_v34 = vadd.f32 %v3479_v54, %v2134_v61 }
 0x234   :  { %v1697_v25 = vsel %vm1447_vm11, %v1696_v13, %v1695_v18  ;;  %v2159_v1 = vrot.slane %v2143_v7, 3  ;;  %v2160_v8 = vrot.slane %v2144_v63, 2  ;;  %v2146_v21 = vadd.f32 %v3389_v47, %v3505_v39 }
 0x235   :  { %1698 = vrot.lane.b32.xlu0 %v1697_v25, %s2986_s15  ;;  %v2162_v15 = vrot.slane %v2145_v29, 1  ;;  %v2165_v19 = vrot.slane %v2147_v30, 7  ;;  %v2167_v6 = vrot.slane %v2148_v49, 6  ;;  %v2169_v5 = vrot.slane %v2149_v33, 5 }
 0x236   :  { %v2161_v20 = vsel %vm1435_vm5, %v2160_v8, %v2159_v1  ;;  %v1713_v35 = vrot.slane %v3521_v28, 4  ;;  %v1714_v40 = vrot.slane %v3521_v28, 5  ;;  %v2171_v42 = vrot.slane %v2150_v34, 4  ;;  %v1825_v53 = vpop.permute.xlu1 %1824 }
 0x237   :  { %v2163_v41 = vsel %vm1437_vm6, %v2162_v15, %v2161_v20  ;;  %v1715_v12 = vrot.slane %v3521_v28, 6  ;;  %v1716_v3 = vrot.slane %v3521_v28, 7  ;;  %v1717_v55 = vrot.slane %v3521_v28, 1 }
 0x238   :  { %v2164_v39 = vsel %vm1439_vm7, %v2146_v21, %v2163_v41  ;;  %v1718_v56 = vrot.slane %v3521_v28, 2  ;;  %v1719_v9 = vrot.slane %v3521_v28, 3  ;;  %v1728_v58 = vadd.f32 %v1713_v35, %v3379_v11 }
 0x239   :  { %v2166_v36 = vsel %vm1441_vm8, %v2165_v19, %v2164_v39  ;;  %v1729_v10 = vadd.f32 %v1714_v40, %v3383_v16  ;;  %v1730_v59 = vadd.f32 %v1715_v12, %v3387_v46  ;;  %v3582_v61 = vmul.f32 %v3431_v23, %v1825_v53 }
 0x23a   :  { %v2168_v60 = vsel %vm1443_vm9, %v2167_v6, %v2166_v36  ;;  %v1731_v7 = vadd.f32 %v1716_v3, %v3391_v48  ;;  %v1733_v63 = vadd.f32 %v1717_v55, %v3421_v14  ;;  %v1734_v13 = vadd.f32 %v1718_v56, %v3458_v52 }
 0x23b   :  { %v2170_v0 = vsel %vm1445_vm10, %v2169_v5, %v2168_v60  ;;  %v1735_v29 = vadd.f32 %v1719_v9, %v3482_v57  ;;  %v1744_v18 = vrot.slane %v1728_v58, 4  ;;  %v1732_v49 = vadd.f32 %v3521_v28, %v3395_v51  ;;  %v2297_v15 = vpop.permute.xlu1 %2296 }
 0x23c   :  { %v2172_v30 = vsel %vm1447_vm11, %v2171_v42, %v2170_v0  ;;  %v1745_v33 = vrot.slane %v1729_v10, 3  ;;  %v1747_v25 = vrot.slane %v1730_v59, 2  ;;  %v1749_v23 = vrot.slane %v1731_v7, 1 }
 0x23d   :  { %2173 = vrot.lane.b32.xlu1 %v2172_v30, %s2986_s15  ;;  %v1752_v34 = vrot.slane %v1733_v63, 7  ;;  %v1754_v1 = vrot.slane %v1734_v13, 6  ;;  %v1756_v8 = vrot.slane %v1735_v29, 5  ;;  %v2187_v19 = vrot.slane %v3535_v38, 4 }
 0x23e   :  { %v1746_v21 = vsel %vm1435_vm5, %v1745_v33, %v1744_v18  ;;  %v2188_v6 = vrot.slane %v3535_v38, 5  ;;  %v2189_v20 = vrot.slane %v3535_v38, 6  ;;  %v2190_v28 = vrot.slane %v3535_v38, 7 }
 0x23f   :  { %v1748_v5 = vsel %vm1437_vm6, %v1747_v25, %v1746_v21  ;;  %v2191_v35 = vrot.slane %v3535_v38, 1  ;;  %v2192_v40 = vrot.slane %v3535_v38, 2  ;;  %v2193_v42 = vrot.slane %v3535_v38, 3 }
 0x240   :  { %v1750_v41 = vsel %vm1439_vm7, %v1749_v23, %v1748_v5  ;;  %v2202_v53 = vadd.f32 %v3377_v44, %v2187_v19  ;;  %v2203_v12 = vadd.f32 %v3381_v45, %v2188_v6  ;;  %v3607_v39 = vmul.f32 %v3433_v24, %v2297_v15 }
 0x241   :  { %v1751_v3 = vsel %vm1441_vm8, %v1732_v49, %v1750_v41  ;;  %v2204_v55 = vadd.f32 %v3385_v32, %v2189_v20  ;;  %v2205_v56 = vadd.f32 %v3389_v47, %v2190_v28  ;;  %v2207_v36 = vadd.f32 %v3411_v62, %v2191_v35 }
 0x242   :  { %v1753_v9 = vsel %vm1443_vm9, %v1752_v34, %v1751_v3  ;;  %v2208_v58 = vadd.f32 %v3455_v4, %v2192_v40  ;;  %v2209_v10 = vadd.f32 %v3479_v54, %v2193_v42  ;;  %v2218_v60 = vrot.slane %v2202_v53, 4 }
 0x243   :  { %v1755_v59 = vsel %vm1445_vm10, %v1754_v1, %v1753_v9  ;;  %v2219_v7 = vrot.slane %v2203_v12, 3  ;;  %v2221_v63 = vrot.slane %v2204_v55, 2  ;;  %v2206_v0 = vadd.f32 %v3393_v50, %v3535_v38 }
 0x244   :  { %v1757_v24 = vsel %vm1447_vm11, %v1756_v8, %v1755_v59  ;;  %v2223_v13 = vrot.slane %v2205_v56, 1  ;;  %v2226_v29 = vrot.slane %v2207_v36, 7  ;;  %v2228_v30 = vrot.slane %v2208_v58, 6 }
 0x245   :  { %1758 = vrot.lane.b32.xlu0 %v1757_v24, %s2987_s16  ;;  %v2220_v18 = vsel %vm1435_vm5, %v2219_v7, %v2218_v60  ;;  %v2230_v49 = vrot.slane %v2209_v10, 5  ;;  %v2246_v33 = vrot.slane %v3450_v37, 3  ;;  %v2247_v23 = vrot.slane %v3450_v37, 4 }
 0x246   :  { %v2222_v25 = vsel %vm1437_vm6, %v2221_v63, %v2220_v18  ;;  %v2248_v34 = vrot.slane %v3450_v37, 5  ;;  %v2249_v1 = vrot.slane %v3450_v37, 6  ;;  %v2250_v8 = vrot.slane %v3450_v37, 7 }
 0x247   :  { %v2224_v38 = vsel %vm1439_vm7, %v2223_v13, %v2222_v25  ;;  %v2251_v21 = vrot.slane %v3450_v37, 1  ;;  %v2252_v15 = vrot.slane %v3450_v37, 2  ;;  %v2261_v6 = vadd.f32 %v3377_v44, %v2246_v33 }
 0x248   :  { %v2225_v19 = vsel %vm1441_vm8, %v2206_v0, %v2224_v38  ;;  %v2262_v20 = vadd.f32 %v3381_v45, %v2247_v23  ;;  %v2263_v5 = vadd.f32 %v3385_v32, %v2248_v34  ;;  %v2264_v35 = vadd.f32 %v3389_v47, %v2249_v1 }
 0x249   :  { %v2227_v28 = vsel %vm1443_vm9, %v2226_v29, %v2225_v19  ;;  %v2265_v40 = vadd.f32 %v3393_v50, %v2250_v8  ;;  %v2266_v41 = vadd.f32 %v3411_v62, %v3450_v37  ;;  %v2267_v53 = vadd.f32 %v3455_v4, %v2251_v21 }
 0x24a   :  { %v2229_v42 = vsel %vm1445_vm10, %v2228_v30, %v2227_v28  ;;  %v2268_v12 = vadd.f32 %v3479_v54, %v2252_v15  ;;  %v2277_v3 = vrot.slane %v2261_v6, 5  ;;  %v2278_v56 = vrot.slane %v2262_v20, 4 }
 0x24b   :  { %v2231_v55 = vsel %vm1447_vm11, %v2230_v49, %v2229_v42  ;;  %v2280_v9 = vrot.slane %v2263_v5, 3  ;;  %v2282_v36 = vrot.slane %v2264_v35, 2  ;;  %v2284_v58 = vrot.slane %v2265_v40, 1 }
 0x24c   :  { %2232 = vrot.lane.b32.xlu1 %v2231_v55, %s2987_s16  ;;  %v2287_v10 = vrot.slane %v2267_v53, 7  ;;  %v2289_v59 = vrot.slane %v2268_v12, 6  ;;  %v1773_v60 = vrot.slane %v3554_v26, 3  ;;  %v2279_v37 = vsel %vm1435_vm5, %v2278_v56, %v2277_v3 }
 0x24d   :  { %v1774_v7 = vrot.slane %v3554_v26, 4  ;;  %v1775_v63 = vrot.slane %v3554_v26, 5  ;;  %v1776_v24 = vrot.slane %v3554_v26, 6  ;;  %v2281_v0 = vsel %vm1437_vm6, %v2280_v9, %v2279_v37 }
 0x24e   :  { %v1777_v13 = vrot.slane %v3554_v26, 7  ;;  %v1778_v29 = vrot.slane %v3554_v26, 1  ;;  %v1779_v18 = vrot.slane %v3554_v26, 2  ;;  %v2283_v30 = vsel %vm1439_vm7, %v2282_v36, %v2281_v0 }
 0x24f   :  { %v1788_v49 = vadd.f32 %v1773_v60, %v3379_v11  ;;  %v1789_v33 = vadd.f32 %v1774_v7, %v3383_v16  ;;  %v1790_v25 = vadd.f32 %v1775_v63, %v3387_v46  ;;  %v2285_v23 = vsel %vm1441_vm8, %v2284_v58, %v2283_v30  ;;  %v2356_v58 = vpop.permute.xlu1 %2355 }
 0x250   :  { %v1791_v34 = vadd.f32 %v1776_v24, %v3391_v48  ;;  %v1792_v1 = vadd.f32 %v1777_v13, %v3395_v51  ;;  %v1793_v38 = vadd.f32 %v3554_v26, %v3421_v14  ;;  %v2286_v8 = vsel %vm1443_vm9, %v2266_v41, %v2285_v23 }
 0x251   :  { %v1794_v21 = vadd.f32 %v1778_v29, %v3458_v52  ;;  %v1795_v15 = vadd.f32 %v1779_v18, %v3482_v57  ;;  %v1804_v19 = vrot.slane %v1788_v49, 5  ;;  %v2288_v6 = vsel %vm1445_vm10, %v2287_v10, %v2286_v8 }
 0x252   :  { %v1805_v20 = vrot.slane %v1789_v33, 4  ;;  %v1807_v5 = vrot.slane %v1790_v25, 3  ;;  %v1809_v28 = vrot.slane %v1791_v34, 2  ;;  %v2290_v35 = vsel %vm1447_vm11, %v2289_v59, %v2288_v6 }
 0x253   :  { %v1811_v40 = vrot.slane %v1792_v1, 1  ;;  %v1814_v42 = vrot.slane %v1794_v21, 7  ;;  %v1816_v53 = vrot.slane %v1795_v15, 6  ;;  %2291 = vrot.lane.b32.xlu1 %v2290_v35, %s2988_s17  ;;  %v1534_v41 = vrot.slane %v3429_v22, 1 }
 0x254   :  { %v1806_v26 = vsel %vm1435_vm5, %v1805_v20, %v1804_v19  ;;  %v1535_v12 = vrot.slane %v3429_v22, 2  ;;  %v1536_v3 = vrot.slane %v3429_v22, 3  ;;  %v1537_v56 = vrot.slane %v3429_v22, 4 }
 0x255   :  { %v1808_v55 = vsel %vm1437_vm6, %v1807_v5, %v1806_v26  ;;  %v1538_v9 = vrot.slane %v3429_v22, 5  ;;  %v1539_v36 = vrot.slane %v3429_v22, 6  ;;  %v1548_v59 = vadd.f32 %v1533_v43, %v3379_v11 }
 0x256   :  { %v1810_v10 = vsel %vm1439_vm7, %v1809_v28, %v1808_v55  ;;  %v1549_v60 = vadd.f32 %v3429_v22, %v3383_v16  ;;  %v1550_v37 = vadd.f32 %v1534_v41, %v3387_v46  ;;  %v1551_v63 = vadd.f32 %v1535_v12, %v3391_v48 }
 0x257   :  { %v1812_v7 = vsel %vm1441_vm8, %v1811_v40, %v1810_v10  ;;  %v1552_v24 = vadd.f32 %v1536_v3, %v3395_v51  ;;  %v1553_v0 = vadd.f32 %v1537_v56, %v3421_v14  ;;  %v1554_v29 = vadd.f32 %v1538_v9, %v3458_v52 }
 0x258   :  { %v1813_v13 = vsel %vm1443_vm9, %v1793_v38, %v1812_v7  ;;  %v1555_v18 = vadd.f32 %v1539_v36, %v3482_v57  ;;  %v1564_v43 = vrot.slane %v1548_v59, 1  ;;  %v3689_v30 = vmul.f32 %v3435_v17, %v2356_v58 }
 0x259   :  { %v1815_v22 = vsel %vm1445_vm10, %v1814_v42, %v1813_v13  ;;  %v1566_v49 = vrot.slane %v1550_v37, 7  ;;  %v1568_v33 = vrot.slane %v1551_v63, 6  ;;  %v1570_v34 = vrot.slane %v1552_v24, 5 }
 0x25a   :  { %v1817_v25 = vsel %vm1447_vm11, %v1816_v53, %v1815_v22  ;;  %v1565_v23 = vsel %vm1435_vm5, %v1549_v60, %v1564_v43  ;;  %v1572_v1 = vrot.slane %v1553_v0, 4  ;;  %v1574_v8 = vrot.slane %v1554_v29, 3 }
 0x25b   :  { %1818 = vrot.lane.b32.xlu0 %v1817_v25, %s2988_s17  ;;  %v1567_v38 = vsel %vm1437_vm6, %v1566_v49, %v1565_v23  ;;  %v1576_v21 = vrot.slane %v1555_v18, 2  ;;  %v1833_v15 = vrot.slane %v3582_v61, 2  ;;  %v1834_v19 = vrot.slane %v3582_v61, 3 }
 0x25c   :  { %v1569_v17 = vsel %vm1439_vm7, %v1568_v33, %v1567_v38  ;;  %v1835_v6 = vrot.slane %v3582_v61, 4  ;;  %v1836_v20 = vrot.slane %v3582_v61, 5  ;;  %v1837_v28 = vrot.slane %v3582_v61, 6 }
 0x25d   :  { %v1571_v5 = vsel %vm1441_vm8, %v1570_v34, %v1569_v17  ;;  %v1838_v35 = vrot.slane %v3582_v61, 7  ;;  %v1839_v40 = vrot.slane %v3582_v61, 1  ;;  %v1848_v53 = vadd.f32 %v1833_v15, %v3379_v11 }
 0x25e   :  { %v1573_v42 = vsel %vm1443_vm9, %v1572_v1, %v1571_v5  ;;  %v1849_v26 = vadd.f32 %v1834_v19, %v3383_v16  ;;  %v1850_v41 = vadd.f32 %v1835_v6, %v3387_v46  ;;  %v1851_v3 = vadd.f32 %v1836_v20, %v3391_v48 }
 0x25f   :  { %v1575_v12 = vsel %vm1445_vm10, %v1574_v8, %v1573_v42  ;;  %v1852_v55 = vadd.f32 %v1837_v28, %v3395_v51  ;;  %v1853_v56 = vadd.f32 %v1838_v35, %v3421_v14  ;;  %v1854_v36 = vadd.f32 %v3582_v61, %v3458_v52 }
 0x260   :  { %v1577_v9 = vsel %vm1447_vm11, %v1576_v21, %v1575_v12  ;;  %v1855_v58 = vadd.f32 %v1839_v40, %v3482_v57  ;;  %v1864_v10 = vrot.slane %v1848_v53, 6  ;;  %v1865_v59 = vrot.slane %v1849_v26, 5 }
 0x261   :  { %1578 = vrot.lane.b32.xlu1 %v1577_v9, %s2984_s7  ;;  %v1867_v60 = vrot.slane %v1850_v41, 4  ;;  %v1869_v37 = vrot.slane %v1851_v3, 3  ;;  %v1871_v7 = vrot.slane %v1852_v55, 2  ;;  %v1873_v63 = vrot.slane %v1853_v56, 1  ;;  %v1468_v9 = vpop.permute.xlu1 %1467 }
 0x262   :  { %v1876_v24 = vrot.slane %v1855_v58, 7  ;;  %v1893_v0 = vrot.slane %v3465_v27, 1  ;;  %v1894_v13 = vrot.slane %v3465_v27, 2  ;;  %v1866_v29 = vsel %vm1435_vm5, %v1865_v59, %v1864_v10 }
 0x263   :  { %v1895_v18 = vrot.slane %v3465_v27, 3  ;;  %v1896_v61 = vrot.slane %v3465_v27, 4  ;;  %v1897_v43 = vrot.slane %v3465_v27, 5  ;;  %v1868_v22 = vsel %vm1437_vm6, %v1867_v60, %v1866_v29 }
 0x264   :  { %v1898_v49 = vrot.slane %v3465_v27, 6  ;;  %v1899_v33 = vrot.slane %v3465_v27, 7  ;;  %v1908_v25 = vadd.f32 %v1893_v0, %v3379_v11  ;;  %v1870_v23 = vsel %vm1439_vm7, %v1869_v37, %v1868_v22 }
 0x265   :  { %v1909_v34 = vadd.f32 %v1894_v13, %v3383_v16  ;;  %v1910_v1 = vadd.f32 %v1895_v18, %v3387_v46  ;;  %v1911_v38 = vadd.f32 %v1896_v61, %v3391_v48  ;;  %v1872_v8 = vsel %vm1441_vm8, %v1871_v7, %v1870_v23 }
 0x266   :  { %v1912_v21 = vadd.f32 %v1897_v43, %v3395_v51  ;;  %v1913_v15 = vadd.f32 %v1898_v49, %v3421_v14  ;;  %v1914_v17 = vadd.f32 %v1899_v33, %v3458_v52  ;;  %v1874_v19 = vsel %vm1443_vm9, %v1873_v63, %v1872_v8 }
 0x267   :  { %v1915_v6 = vadd.f32 %v3465_v27, %v3482_v57  ;;  %v1924_v20 = vrot.slane %v1908_v25, 7  ;;  %v1925_v5 = vrot.slane %v1909_v34, 6  ;;  %v1875_v28 = vsel %vm1445_vm10, %v1854_v36, %v1874_v19 }
 0x268   :  { %v1927_v35 = vrot.slane %v1910_v1, 5  ;;  %v1929_v40 = vrot.slane %v1911_v38, 4  ;;  %v1931_v42 = vrot.slane %v1912_v21, 3  ;;  %v1877_v53 = vsel %vm1447_vm11, %v1876_v24, %v1875_v28 }
 0x269   :  { %v1926_v26 = vsel %vm1435_vm5, %v1925_v5, %v1924_v20  ;;  %v1933_v41 = vrot.slane %v1913_v15, 2  ;;  %v1935_v12 = vrot.slane %v1914_v17, 1  ;;  %1878 = vrot.lane.b32.xlu0 %v1877_v53, %s2989_s18  ;;  %v2305_v27 = vrot.slane %v3607_v39, 2 }
 0x26a   :  { %v1928_v3 = vsel %vm1437_vm6, %v1927_v35, %v1926_v26  ;;  %v2306_v55 = vrot.slane %v3607_v39, 3  ;;  %v2307_v56 = vrot.slane %v3607_v39, 4  ;;  %v2308_v58 = vrot.slane %v3607_v39, 5 }
 0x26b   :  { %v1930_v36 = vsel %vm1439_vm7, %v1929_v40, %v1928_v3  ;;  %v2309_v10 = vrot.slane %v3607_v39, 6  ;;  %v2310_v59 = vrot.slane %v3607_v39, 7  ;;  %v2311_v37 = vrot.slane %v3607_v39, 1 }
 0x26c   :  { %v1932_v60 = vsel %vm1441_vm8, %v1931_v42, %v1930_v36  ;;  %v2320_v7 = vadd.f32 %v3377_v44, %v2305_v27  ;;  %v2321_v63 = vadd.f32 %v3381_v45, %v2306_v55  ;;  %v2322_v0 = vadd.f32 %v3385_v32, %v2307_v56 }
 0x26d   :  { %v1934_v24 = vsel %vm1443_vm9, %v1933_v41, %v1932_v60  ;;  %v2323_v13 = vadd.f32 %v3389_v47, %v2308_v58  ;;  %v2324_v29 = vadd.f32 %v3393_v50, %v2309_v10  ;;  %v3760_v18 = vmul.f32 %v3444_v31, %v1468_v9 }
 0x26e   :  { %v1936_v61 = vsel %vm1445_vm10, %v1935_v12, %v1934_v24  ;;  %v2325_v43 = vadd.f32 %v3411_v62, %v2310_v59  ;;  %v2326_v22 = vadd.f32 %v3455_v4, %v3607_v39  ;;  %v2336_v33 = vrot.slane %v2320_v7, 6 }
 0x26f   :  { %v1937_v49 = vsel %vm1447_vm11, %v1915_v6, %v1936_v61  ;;  %v2337_v25 = vrot.slane %v2321_v63, 5  ;;  %v2339_v23 = vrot.slane %v2322_v0, 4  ;;  %v2327_v34 = vadd.f32 %v3479_v54, %v2311_v37 }
 0x270   :  { %1938 = vrot.lane.b32.xlu0 %v1937_v49, %s2990_s19  ;;  %v2341_v1 = vrot.slane %v2323_v13, 3  ;;  %v2343_v31 = vrot.slane %v2324_v29, 2  ;;  %v2345_v38 = vrot.slane %v2325_v43, 1  ;;  %v2364_v21 = vrot.slane %v3689_v30, 1 }
 0x271   :  { %v2338_v8 = vsel %vm1435_vm5, %v2337_v25, %v2336_v33  ;;  %v2365_v15 = vrot.slane %v3689_v30, 2  ;;  %v2366_v39 = vrot.slane %v3689_v30, 3  ;;  %v2367_v19 = vrot.slane %v3689_v30, 4 }
 0x272   :  { %v2340_v17 = vsel %vm1437_vm6, %v2339_v23, %v2338_v8  ;;  %v2368_v6 = vrot.slane %v3689_v30, 5  ;;  %v2369_v20 = vrot.slane %v3689_v30, 6  ;;  %v2370_v28 = vrot.slane %v3689_v30, 7 }
 0x273   :  { %v2342_v5 = vsel %vm1439_vm7, %v2341_v1, %v2340_v17  ;;  %v2379_v35 = vadd.f32 %v3377_v44, %v2364_v21  ;;  %v2380_v40 = vadd.f32 %v3381_v45, %v2365_v15  ;;  %v2381_v53 = vadd.f32 %v3385_v32, %v2366_v39 }
 0x274   :  { %v2344_v42 = vsel %vm1441_vm8, %v2343_v31, %v2342_v5  ;;  %v2382_v26 = vadd.f32 %v3389_v47, %v2367_v19  ;;  %v2383_v41 = vadd.f32 %v3393_v50, %v2368_v6 }
 0x275   :  { %2920 = shalt.err (!%p2917_p6)
}
 0x276   :  { %s2921_s23 = scalar_lea.hbm %s3887_s8, 128 }
 0x277   :  { %p2922_p7 = scmp.ne.s32.totalorder %s3887_s8, %s2921_s23  ;;  %p2925_p8 = scmp.lt.u32.totalorder %s2921_s23, %s3887_s8 }
 0x279   :  { %p2927_p9 = pnand %p2925_p8, %p2922_p7 }
 0x27b   :  { %2930 = shalt.err (!%p2927_p9)
}
 0x27c   :  { %2422 = dma.vmem_to_hbm [thread:$0]  %s2420_s12, 128, %s3887_s8, [#allocation4]   ;;  %v2346_v12 = vsel %vm1443_vm9, %v2345_v38, %v2344_v42  ;;  %v2348_v3 = vrot.slane %v2327_v34, 7  ;;  %v2384_v27 = vadd.f32 %v3411_v62, %v2369_v20  ;;  %v2385_v55 = vadd.f32 %v3455_v4, %v2370_v28 }
 0x27d   :  { %v2347_v56 = vsel %vm1445_vm10, %v2326_v22, %v2346_v12  ;;  %v2395_v9 = vrot.slane %v2379_v35, 7  ;;  %v2396_v36 = vrot.slane %v2380_v40, 6  ;;  %v2398_v58 = vrot.slane %v2381_v53, 5  ;;  %s2992_s8 = smov [#allocation8]  }
 0x27e   :  { %v2349_v10 = vsel %vm1447_vm11, %v2348_v3, %v2347_v56  ;;  %v2386_v59 = vadd.f32 %v3479_v54, %v3689_v30  ;;  %v2400_v60 = vrot.slane %v2382_v26, 4  ;;  %v2402_v37 = vrot.slane %v2383_v41, 3  ;;  %s2429_s28 = sshll.u32 %s2992_s8, 4  ;;  %s2430_s28 = int_to_ptr.vmem [resolvable:$true] %s2429_s28 }
 0x27f   :  { %2350 = vrot.lane.b32.xlu1 %v2349_v10, %s2989_s18  ;;  %v2397_v7 = vsel %vm1435_vm5, %v2396_v36, %v2395_v9  ;;  %v2404_v63 = vrot.slane %v2384_v27, 2  ;;  %v1953_v24 = vrot.slane %v3489_v2, 1  ;;  %v1954_v0 = vrot.slane %v3489_v2, 2  ;;  %s2931_s29 = scalar_lea.vmem %s2430_s28, 256  ;;  %p2936_p11 = scmp.lt.s32.totalorder %s2430_s28, %s2430_s28 }
 0x280   :  { %v2399_v13 = vsel %vm1437_vm6, %v2398_v58, %v2397_v7  ;;  %v1955_v29 = vrot.slane %v3489_v2, 3  ;;  %v1956_v61 = vrot.slane %v3489_v2, 4  ;;  %v1957_v43 = vrot.slane %v3489_v2, 5  ;;  %p2932_p10 = scmp.ne.s32.totalorder %s2430_s28, %s2931_s29  ;;  %p2937_p12 = scmp.lt.s32.totalorder %s2931_s29, %s2931_s29 }
 0x281   :  { %v2401_v30 = vsel %vm1439_vm7, %v2400_v60, %v2399_v13  ;;  %v2406_v22 = vrot.slane %v2385_v55, 1  ;;  %v1958_v49 = vrot.slane %v3489_v2, 6  ;;  %v1959_v33 = vrot.slane %v3489_v2, 7 }
 0x282   :  { %v2403_v25 = vsel %vm1441_vm8, %v2402_v37, %v2401_v30  ;;  %v1969_v23 = vadd.f32 %v3381_v45, %v1953_v24  ;;  %v1970_v34 = vadd.f32 %v3385_v32, %v1954_v0  ;;  %v1971_v1 = vadd.f32 %v3389_v47, %v1955_v29  ;;  %p2938_p13 = por %p2937_p12, %p2936_p11 }
 0x283   :  { %v2405_v31 = vsel %vm1443_vm9, %v2404_v63, %v2403_v25  ;;  %v1968_v38 = vadd.f32 %v3377_v44, %v3489_v2  ;;  %v1972_v8 = vadd.f32 %v3393_v50, %v1956_v61  ;;  %v1973_v21 = vadd.f32 %v3411_v62, %v1957_v43 }
 0x284   :  { %v2407_v15 = vsel %vm1445_vm10, %v2406_v22, %v2405_v31  ;;  %v1974_v39 = vadd.f32 %v3455_v4, %v1958_v49  ;;  %v1984_v17 = vrot.slane %v1969_v23, 7  ;;  %v1986_v19 = vrot.slane %v1970_v34, 6  ;;  %p2939_p0 = pnand %p2938_p13, %p2932_p10 }
 0x285   :  { %v2408_v45 = vsel %vm1447_vm11, %v2386_v59, %v2407_v15  ;;  %v1988_v47 = vrot.slane %v1971_v1, 5  ;;  %v1975_v6 = vadd.f32 %v3479_v54, %v1959_v33  ;;  %v1990_v50 = vrot.slane %v1972_v8, 4 }
 0x286   :  { %2409 = vrot.lane.b32.xlu1 %v2408_v45, %s2990_s19  ;;  %v1985_v32 = vsel %vm1435_vm5, %v1984_v17, %v1968_v38  ;;  %v1992_v2 = vrot.slane %v1973_v21, 3  ;;  %v1476_v62 = vrot.slane %v3760_v18, 1  ;;  %v1994_v4 = vrot.slane %v1974_v39, 2 }
 0x287   :  { %v1987_v44 = vsel %vm1437_vm6, %v1986_v19, %v1985_v32  ;;  %v1477_v5 = vrot.slane %v3760_v18, 2  ;;  %v1478_v28 = vrot.slane %v3760_v18, 3  ;;  %v1479_v40 = vrot.slane %v3760_v18, 4 }
 0x288   :  { %v1989_v20 = vsel %vm1439_vm7, %v1988_v47, %v1987_v44  ;;  %v1480_v42 = vrot.slane %v3760_v18, 5  ;;  %v1481_v54 = vrot.slane %v3760_v18, 6  ;;  %v1996_v26 = vrot.slane %v1975_v6, 1 }
 0x289   :  { %v1991_v35 = vsel %vm1441_vm8, %v1990_v50, %v1989_v20  ;;  %v1482_v41 = vrot.slane %v3760_v18, 7  ;;  %v1492_v12 = vadd.f32 %v1476_v62, %v3383_v16  ;;  %v1493_v27 = vadd.f32 %v1477_v5, %v3387_v46 }
 0x28a   :  { %v1993_v53 = vsel %vm1443_vm9, %v1992_v2, %v1991_v35  ;;  %v1494_v55 = vadd.f32 %v1478_v28, %v3391_v48  ;;  %v1495_v56 = vadd.f32 %v1479_v40, %v3395_v51  ;;  %v1491_v36 = vadd.f32 %v3760_v18, %v3379_v11 }
 0x28b   :  { %v1995_v3 = vsel %vm1445_vm10, %v1994_v4, %v1993_v53  ;;  %v1496_v58 = vadd.f32 %v1480_v42, %v3421_v14  ;;  %v1507_v10 = vrot.slane %v1492_v12, 7  ;;  %v1497_v16 = vadd.f32 %v1481_v54, %v3458_v52 }
 0x28c   :  { %v1997_v9 = vsel %vm1447_vm11, %v1996_v26, %v1995_v3  ;;  %v1509_v59 = vrot.slane %v1493_v27, 6  ;;  %v1511_v46 = vrot.slane %v1494_v55, 5  ;;  %v1498_v48 = vadd.f32 %v1482_v41, %v3482_v57 }
 0x28d   :  { %1999 = vst.msk [vmem:[#allocation8 + $0x8] sm:$0xff] %vm186_vm12, %v1997_v9  ;;  %v1508_v60 = vsel %vm1435_vm5, %v1507_v10, %v1491_v36  ;;  %v1513_v37 = vrot.slane %v1495_v56, 4  ;;  %v1515_v63 = vrot.slane %v1496_v58, 3  ;;  %v1517_v14 = vrot.slane %v1497_v16, 2 }
 0x28e   :  { %v1510_v51 = vsel %vm1437_vm6, %v1509_v59, %v1508_v60  ;;  %v1519_v24 = vrot.slane %v1498_v48, 1  ;;  %vm1581_vm13 = vcmask 261248   ;;  %vm1641_vm14 = vcmask 392448  }
 0x28f   :  { %v1512_v7 = vsel %vm1439_vm7, %v1511_v46, %v1510_v51  ;;  %vm1701_vm15 = vcmask 523648   ;;  %vm1761_vm0 = vcmask 654848   ;;  %vm1821_vm1 = vcmask 786048  }
 0x290   :  { %v1514_v11 = vsel %vm1441_vm8, %v1513_v37, %v1512_v7  ;;  %vm1881_vm2 = vcmask 917248   ;;  %vm1941_vm3 = vcmask 1048448  }
 0x291   :  { %v1516_v18 = vsel %vm1443_vm9, %v1515_v63, %v1514_v11 }
 0x292   :  { %v1518_v52 = vsel %vm1445_vm10, %v1517_v14, %v1516_v18 }
 0x293   :  { %v1520_v0 = vsel %vm1447_vm11, %v1519_v24, %v1518_v52 }
 0x294   :  { %1522 = vst.msk [vmem:[#allocation8] sm:$0xff] %vm186_vm12, %v1520_v0 }
 0x296   :  { %v2056_v57 = vpop.permute.xlu1 %2055 }
 0x297   :  { %2058 = vst.msk [vmem:[#allocation8 + $0x8] sm:$0xff] %vm1581_vm13, %v2056_v57  ;;  %v1639_v30 = vpop.permute.xlu0 %1638 }
 0x2a0   :  { %v2115_v13 = vpop.permute.xlu1 %2114 }
 0x2a1   :  { %2117 = vst.msk [vmem:[#allocation8 + $0x8] sm:$0xff] %vm1641_vm14, %v2115_v13 }
 0x2a7   :  { %v1699_v22 = vpop.permute.xlu0 %1698 }
 0x2af   :  { %v2174_v29 = vpop.permute.xlu1 %2173 }
 0x2b0   :  { %2176 = vst.msk [vmem:[#allocation8 + $0x8] sm:$0xff] %vm1701_vm15, %v2174_v29 }
 0x2b7   :  { %v1759_v49 = vpop.permute.xlu0 %1758 }
 0x2be   :  { %v2233_v61 = vpop.permute.xlu1 %2232 }
 0x2bf   :  { %2235 = vst.msk [vmem:[#allocation8 + $0x8] sm:$0xff] %vm1761_vm0, %v2233_v61 }
 0x2c5   :  { %v2292_v43 = vpop.permute.xlu1 %2291 }
 0x2c6   :  { %2294 = vst.msk [vmem:[#allocation8 + $0x8] sm:$0xff] %vm1821_vm1, %v2292_v43 }
 0x2cd   :  { %v1819_v25 = vpop.permute.xlu0 %1818 }
 0x2d3   :  { %v1579_v33 = vpop.permute.xlu1 %1578 }
 0x2d4   :  { %1582 = vst.msk [vmem:[#allocation8] sm:$0xff] %vm1581_vm13, %v1579_v33 }
 0x2d5   :  { %1642 = vst.msk [vmem:[#allocation8] sm:$0xff] %vm1641_vm14, %v1639_v30 }
 0x2d6   :  { %1702 = vst.msk [vmem:[#allocation8] sm:$0xff] %vm1701_vm15, %v1699_v22 }
 0x2d7   :  { %1762 = vst.msk [vmem:[#allocation8] sm:$0xff] %vm1761_vm0, %v1759_v49 }
 0x2d8   :  { %1822 = vst.msk [vmem:[#allocation8] sm:$0xff] %vm1821_vm1, %v1819_v25 }
 0x2db   :  { %v1879_v23 = vpop.permute.xlu0 %1878 }
 0x2dc   :  { %1882 = vst.msk [vmem:[#allocation8] sm:$0xff] %vm1881_vm2, %v1879_v23 }
 0x2e2   :  { %v1939_v34 = vpop.permute.xlu0 %1938 }
 0x2e3   :  { %1942 = vst.msk [vmem:[#allocation8] sm:$0xff] %vm1941_vm3, %v1939_v34 }
 0x2f1   :  { %v2351_v1 = vpop.permute.xlu1 %2350 }
 0x2f2   :  { %2353 = vst.msk [vmem:[#allocation8 + $0x8] sm:$0xff] %vm1881_vm2, %v2351_v1 }
 0x2f8   :  { %v2410_v31 = vpop.permute.xlu1 %2409 }
 0x2f9   :  { %2412 = vst.msk [vmem:[#allocation8 + $0x8] sm:$0xff] %vm1941_vm3, %v2410_v31 }
 0x2fa   :  { %2942 = shalt.err (!%p2939_p0)
}
 0x2fb   :  { %s2943_s5 = scalar_lea.hbm %s3888_s9, 256 }
 0x2fc   :  { %p2944_p1 = scmp.ne.s32.totalorder %s3888_s9, %s2943_s5  ;;  %p2947_p2 = scmp.lt.u32.totalorder %s2943_s5, %s3888_s9 }
 0x2fe   :  { %p2949_p3 = pnand %p2947_p2, %p2944_p1 }
 0x300   :  { %2952 = shalt.err (!%p2949_p3)
}
 0x301   :  { %2432 = dma.vmem_to_hbm [thread:$0]  %s2430_s28, 256, %s3888_s9, [#allocation9]  }
 0x302   :  { %2957 = dma.done.wait [#allocation4], 128  }
 0x303   :  { %2958 = vsyncadd [#allocation4], 4294967168 }
 0x304   :  { %2959 = dma.done.wait [#allocation9], 256  }
 0x305   :  { %2960 = vsyncadd [#allocation9], 4294967040 }
 0x306   :  { %2439 = vsyncpa [#allocation3], 1 }
 0x307   :  { %2440 = vsyncpa [#allocation6], 1 }
 0x308   :  { %2441 = vsyncpa [#allocation4], 1 }
 0x309   :  { %2442 = vsyncpa [#allocation9], 1 }

</bundles_post_ra>
